<compile_context>
chip_gen: v7x
topology: tpu7x:2x2x1
jax: 0.10.0
libtpu: 0.0.40
codegen_flags: <defaults>
</compile_context>

<pallas_src>
import math
import functools

import jax
import jax.numpy as jnp
from jax.experimental import pallas as pl
from jax.experimental.pallas import tpu as pltpu


# ----------------------------- sizing helpers -----------------------------

def _vmem_limit_bytes():
    """Scoped-VMEM limit per generation: cap on v7x (64 MiB/TC), larger elsewhere."""
    try:
        kind = jax.devices()[0].device_kind.lower()
    except Exception:
        kind = ""
    if "v7" in kind:
        return 48 * 1024 * 1024
    return 64 * 1024 * 1024        # v5e / v6e have 128 MiB physical VMEM


def _pick_tile(dim, max_tile):
    """Largest multiple-of-128 tile <= max_tile dividing dim (else the full dim)."""
    if dim <= max_tile:
        return dim
    for t in range(max_tile - max_tile % 128, 127, -128):
        if dim % t == 0:
            return t
    # TODO(synk): dims with no 128-multiple divisor fall back to the full dim; pad
    # instead if that would exceed the VMEM budget.
    return dim


def _proj_tile(din, dout, limit):
    # one streamed bf16 weight block (din, tn), double-buffered, within ~60% budget
    budget = int(limit * 0.6)
    max_tn = max(128, (budget // (2 * din * 2)) // 128 * 128)
    return _pick_tile(dout, min(2048, max_tn))


def _mlp_tile(d, inter, limit):
    # three streamed bf16 weight blocks of ~(d, ti) each, double-buffered
    budget = int(limit * 0.6)
    max_ti = max(128, (budget // (2 * 3 * d * 2)) // 128 * 128)
    return _pick_tile(inter, min(1024, max_ti))


# ----------------------------- Pallas kernels -----------------------------

def _rmsnorm_kernel(x_ref, w_ref, o_ref, *, eps):
    x = x_ref[...]
    ms = jnp.mean(x * x, axis=-1, keepdims=True)
    o_ref[...] = (x * jax.lax.rsqrt(ms + eps)) * w_ref[...]


def rmsnorm(x2d, w, eps):
    # Final model norm only (once per forward); small, un-gridded.
    R, D = x2d.shape
    return pl.pallas_call(
        functools.partial(_rmsnorm_kernel, eps=eps),
        out_shape=jax.ShapeDtypeStruct((R, D), jnp.float32),
        in_specs=[pl.BlockSpec(memory_space=pltpu.MemorySpace.VMEM)] * 2,
        out_specs=pl.BlockSpec(memory_space=pltpu.MemorySpace.VMEM),
    )(x2d, w.reshape(1, D))


def _rms_qkv_kernel(x_ref, ln_ref, w_ref, b_ref, o_ref, *, eps):
    # Fused RMSNorm + (x @ W + b) over one lane-dense output tile.
    # The norm touches only R (= batch) rows: recomputing it per tile is negligible
    # next to the streamed (D, tn) weight tile, and keeps the grid axis "parallel"
    # (a pid==0 scratch hoist would break under megacore sharding).
    x = x_ref[...]                                   # (R, D) f32
    ms = jnp.mean(x * x, axis=-1, keepdims=True)
    xn = ((x * jax.lax.rsqrt(ms + eps)) * ln_ref[...]).astype(jnp.bfloat16)
    o_ref[...] = jnp.dot(xn, w_ref[...],             # bf16 x bf16 -> f32 accumulate
                         preferred_element_type=jnp.float32) + b_ref[...]


def rms_qkv(x2d, ln_w, w, b, eps, *, vmem_limit):
    # x2d: (R, D) f32; w: (D, N) bf16 pre-transposed; b: (N,) f32
    R, D = x2d.shape
    N = w.shape[1]
    tn = _proj_tile(D, N, vmem_limit)
    return pl.pallas_call(
        functools.partial(_rms_qkv_kernel, eps=eps),
        out_shape=jax.ShapeDtypeStruct((R, N), jnp.float32),
        grid_spec=pltpu.PrefetchScalarGridSpec(
            num_scalar_prefetch=0,
            grid=(N // tn,),
            in_specs=[
                pl.BlockSpec((R, D), lambda n: (0, 0)),
                pl.BlockSpec((1, D), lambda n: (0, 0)),
                pl.BlockSpec((D, tn), lambda n: (0, n)),
                pl.BlockSpec((1, tn), lambda n: (0, n)),
            ],
            out_specs=pl.BlockSpec((R, tn), lambda n: (0, n)),
        ),
        compiler_params=pltpu.CompilerParams(
            dimension_semantics=("parallel",),
            vmem_limit_bytes=vmem_limit,
        ),
    )(x2d, ln_w.reshape(1, D), w, b.reshape(1, N))


def _matmul_kernel(x_ref, w_ref, o_ref):
    o_ref[...] = jnp.dot(x_ref[...].astype(jnp.bfloat16), w_ref[...],
                         preferred_element_type=jnp.float32)


def linear_nobias(x2d, w, *, vmem_limit):
    # Bias-free projection (o_proj); w: (Din, Dout) bf16 pre-transposed.
    R, Din = x2d.shape
    N = w.shape[1]
    tn = _proj_tile(Din, N, vmem_limit)
    return pl.pallas_call(
        _matmul_kernel,
        out_shape=jax.ShapeDtypeStruct((R, N), jnp.float32),
        grid_spec=pltpu.PrefetchScalarGridSpec(
            num_scalar_prefetch=0,
            grid=(N // tn,),
            in_specs=[
                pl.BlockSpec((R, Din), lambda n: (0, 0)),
                pl.BlockSpec((Din, tn), lambda n: (0, n)),
            ],
            out_specs=pl.BlockSpec((R, tn), lambda n: (0, n)),
        ),
        compiler_params=pltpu.CompilerParams(
            dimension_semantics=("parallel",),
            vmem_limit_bytes=vmem_limit,
        ),
    )(x2d, w)


def _rms_mlp_kernel(x_ref, ln_ref, wg_ref, wu_ref, wd_ref, o_ref, xn_ref, *, eps):
    # grid = (output-D tiles [parallel], intermediate-I tiles [arbitrary reduction]).
    # The normed bf16 activation is computed once per output tile (k == 0) into a
    # VMEM scratch and reused across the whole I reduction; safe under megacore
    # sharding of the leading axis because each core runs full k-sweeps.
    @pl.when(pl.program_id(1) == 0)
    def _():
        x = x_ref[...]                               # (R, D) f32
        ms = jnp.mean(x * x, axis=-1, keepdims=True)
        xn_ref[...] = ((x * jax.lax.rsqrt(ms + eps)) * ln_ref[...]).astype(jnp.bfloat16)
        o_ref[...] = jnp.zeros_like(o_ref)

    xn = xn_ref[...]                                 # (R, D) bf16
    g = jnp.dot(xn, wg_ref[...], preferred_element_type=jnp.float32)
    u = jnp.dot(xn, wu_ref[...], preferred_element_type=jnp.float32)
    hcur = ((g * jax.nn.sigmoid(g)) * u).astype(jnp.bfloat16)
    o_ref[...] += jnp.dot(hcur, wd_ref[...], preferred_element_type=jnp.float32)


def rms_mlp(x2d, ln_w, wg, wu, wd, eps, *, vmem_limit, d_tile=None):
    # wg/wu: (D, I) bf16; wd: (I, D) bf16
    R, D = x2d.shape
    I = wg.shape[1]
    ti = _mlp_tile(D, I, vmem_limit)
    # Output-D tiling: one tile by default (extra tiles re-stream wg/wu). Shrink
    # d_tile to split work across both v7x TensorCores if that trade-off pays.
    td = D if d_tile is None else _pick_tile(D, d_tile)
    return pl.pallas_call(
        functools.partial(_rms_mlp_kernel, eps=eps),
        out_shape=jax.ShapeDtypeStruct((R, D), jnp.float32),
        grid_spec=pltpu.PrefetchScalarGridSpec(
            num_scalar_prefetch=0,
            grid=(D // td, I // ti),
            in_specs=[
                pl.BlockSpec((R, D), lambda d, k: (0, 0)),
                pl.BlockSpec((1, D), lambda d, k: (0, 0)),
                pl.BlockSpec((D, ti), lambda d, k: (0, k)),
                pl.BlockSpec((D, ti), lambda d, k: (0, k)),
                pl.BlockSpec((ti, td), lambda d, k: (k, d)),
            ],
            out_specs=pl.BlockSpec((R, td), lambda d, k: (0, d)),
            scratch_shapes=[pltpu.VMEM((R, D), jnp.bfloat16)],
        ),
        compiler_params=pltpu.CompilerParams(
            dimension_semantics=("parallel", "arbitrary"),
            vmem_limit_bytes=vmem_limit,
        ),
    )(x2d, ln_w.reshape(1, D), wg, wu, wd)


def _gqa_attn_kernel(len_ref, q_ref, k_ref, v_ref, o_ref, *, scale):
    # One (batch, kv_head) group per grid step: n_rep query heads share this K/V.
    q = q_ref[0, 0].astype(jnp.bfloat16)             # (n_rep, hd)
    k = k_ref[0, 0]                                   # (Tmax, hd) bf16, straight from cache
    v = v_ref[0, 0]                                   # (Tmax, hd) bf16
    s = jax.lax.dot_general(q, k, (((1,), (1,)), ((), ())),
                            preferred_element_type=jnp.float32) * scale   # (n_rep, Tmax)
    t = len_ref[0]                                    # live context length (scalar prefetch)
    mask = jax.lax.broadcasted_iota(jnp.int32, s.shape, 1) < t
    s = jnp.where(mask, s, -jnp.inf)
    m = jnp.max(s, axis=-1, keepdims=True)
    p = jnp.exp(s - m)
    l = jnp.sum(p, axis=-1, keepdims=True)
    o = jnp.dot(p.astype(jnp.bfloat16), v, preferred_element_type=jnp.float32)
    o_ref[0, 0] = o * pl.reciprocal(l, approx=True)


def gqa_attention(q, cache_k, cache_v, length, scale, *, vmem_limit):
    # q: (B, KVH, n_rep, hd) f32; cache_k/v: full (Bmax, KVH, Tmax, hd) bf16 cache
    # (no host-side :T slice); length: (1,) int32.
    # TODO(synk): for very long Tmax, tile the T axis and skip/mask whole tiles >= T.
    B, KVH, n_rep, hd = q.shape
    Tmax = cache_k.shape[2]
    return pl.pallas_call(
        functools.partial(_gqa_attn_kernel, scale=scale),
        out_shape=jax.ShapeDtypeStruct((B, KVH, n_rep, hd), jnp.float32),
        grid_spec=pltpu.PrefetchScalarGridSpec(
            num_scalar_prefetch=1,
            grid=(B, KVH),
            in_specs=[
                pl.BlockSpec((1, 1, n_rep, hd), lambda b, h, L: (b, h, 0, 0)),
                pl.BlockSpec((1, 1, Tmax, hd), lambda b, h, L: (b, h, 0, 0)),
                pl.BlockSpec((1, 1, Tmax, hd), lambda b, h, L: (b, h, 0, 0)),
            ],
            out_specs=pl.BlockSpec((1, 1, n_rep, hd), lambda b, h, L: (b, h, 0, 0)),
        ),
        compiler_params=pltpu.CompilerParams(
            dimension_semantics=("parallel", "parallel"),
            vmem_limit_bytes=vmem_limit,
        ),
    )(length, q, cache_k, cache_v)


# ----------------------------- JAX glue (RoPE, cache, params) -----------------------------

def precompute_freqs(head_dim, seq_len, theta):
    tn = jnp.arange(0, head_dim, 2, dtype=jnp.float32)
    inv = 1.0 / (theta ** (tn / head_dim))
    m = jnp.arange(seq_len, dtype=jnp.float32)
    freqs = jnp.outer(m, inv)
    return jnp.cos(freqs), jnp.sin(freqs)


def apply_rope(x, cos, sin):
    # x: (B, S, H, hd); interleaved (even, odd) pairs as in torch.view_as_complex
    B, S, H, hd = x.shape
    xr = x.reshape(B, S, H, hd // 2, 2)
    xe, xo = xr[..., 0], xr[..., 1]
    c = cos[None, :, None, :]
    s = sin[None, :, None, :]
    oe = xe * c - xo * s
    oo = xe * s + xo * c
    return jnp.stack([oe, oo], axis=-1).reshape(B, S, H, hd)


def init_params(key, cfg):
    D = cfg["hidden_size"]
    H = cfg["num_attention_heads"]
    KVH = cfg["num_key_value_heads"]
    hd = D // H
    I = cfg["intermediate_size"]
    V = cfg["vocab_size"]
    Dq, Dkv = H * hd, KVH * hd
    Nqkv = Dq + 2 * Dkv

    def nrm(k, shape, scale=0.02, dtype=jnp.float32):
        return (scale * jax.random.normal(k, shape, dtype=jnp.float32)).astype(dtype)

    keys = jax.random.split(key, 2 + cfg["num_hidden_layers"])
    params = {"embed": nrm(keys[0], (V, D)), "norm": jnp.ones((D,), jnp.float32)}
    layers = []
    for li in range(cfg["num_hidden_layers"]):
        ks = jax.random.split(keys[2 + li], 10)
        layers.append({
            # pre-transposed (Din, Dout) bf16 weights; q/k/v fused along Dout
            "wqkv": nrm(ks[0], (D, Nqkv), dtype=jnp.bfloat16),
            "bqkv": nrm(ks[1], (Nqkv,)),
            "wo":   nrm(ks[2], (Dq, D), dtype=jnp.bfloat16),
            "wg":   nrm(ks[3], (D, I), dtype=jnp.bfloat16),
            "wu":   nrm(ks[4], (D, I), dtype=jnp.bfloat16),
            "wd":   nrm(ks[5], (I, D), dtype=jnp.bfloat16),
            "input_ln": jnp.ones((D,), jnp.float32),
            "post_ln":  jnp.ones((D,), jnp.float32),
        })
    params["layers"] = layers
    return params


def decoder_layer(h, p, start_pos, cos, sin, cache_k, cache_v, cfg, vmem_limit):
    B, S, D = h.shape                      # S == 1 (decode)
    H = cfg["num_attention_heads"]
    KVH = cfg["num_key_value_heads"]
    hd = D // H
    n_rep = H // KVH
    eps = cfg["rms_norm_eps"]
    Dq, Dkv = H * hd, KVH * hd

    # fused RMSNorm + concatenated QKV projection (one gridded pallas_call)
    qkv = rms_qkv(h.reshape(B * S, D), p["input_ln"], p["wqkv"], p["bqkv"], eps,
                  vmem_limit=vmem_limit)
    xq = qkv[:, :Dq].reshape(B, S, H, hd)
    xk = qkv[:, Dq:Dq + Dkv].reshape(B, S, KVH, hd)
    xv = qkv[:, Dq + Dkv:].reshape(B, S, KVH, hd)

    # TODO(synk): fuse RoPE (pltpu.roll on even/odd pairs) and the single-row KV
    # cache write (input_output_aliases) into the QKV kernel epilogue.
    xq = apply_rope(xq, cos, sin)
    xk = apply_rope(xk, cos, sin)

    # head-major bf16 cache append: with donated caches under jit this is an
    # in-place (B, KVH, 1, hd) row write, not a full-cache copy.
    cache_k = jax.lax.dynamic_update_slice_in_dim(
        cache_k, jnp.transpose(xk, (0, 2, 1, 3)).astype(cache_k.dtype), start_pos, axis=2)
    cache_v = jax.lax.dynamic_update_slice_in_dim(
        cache_v, jnp.transpose(xv, (0, 2, 1, 3)).astype(cache_v.dtype), start_pos, axis=2)

    length = jnp.reshape(start_pos + S, (1,)).astype(jnp.int32)
    q = xq.reshape(B, KVH, n_rep, hd)                        # GQA grouping (S == 1)
    attn = gqa_attention(q, cache_k, cache_v, length, 1.0 / math.sqrt(hd),
                         vmem_limit=vmem_limit)              # (B, KVH, n_rep, hd)
    attn = attn.reshape(B, H * hd)

    h = h + linear_nobias(attn, p["wo"], vmem_limit=vmem_limit).reshape(B, S, D)
    h = h + rms_mlp(h.reshape(B * S, D), p["post_ln"],
                    p["wg"], p["wu"], p["wd"], eps,
                    vmem_limit=vmem_limit).reshape(B, S, D)
    return h, cache_k, cache_v


def make_model_forward(cfg, cos_full, sin_full):
    vmem_limit = _vmem_limit_bytes()

    def fwd(params, tokens, start_pos, caches):
        B, S = tokens.shape                                  # S == 1 (decode)
        D = cfg["hidden_size"]
        h = params["embed"][tokens]                          # (B, 1, D)
        cos = jax.lax.dynamic_slice_in_dim(cos_full, start_pos, S, axis=0)
        sin = jax.lax.dynamic_slice_in_dim(sin_full, start_pos, S, axis=0)

        new_caches = []
        for li, lp in enumerate(params["layers"]):
            ck, cv = caches[li]
            h, ck, cv = decoder_layer(h, lp, start_pos, cos, sin, ck, cv, cfg, vmem_limit)
            new_caches.append((ck, cv))

        h = rmsnorm(h.reshape(B * S, D), params["norm"], cfg["rms_norm_eps"]).reshape(B, S, D)
        return h, new_caches

    # caches donated -> in-place row writes; start_pos traced -> no per-position recompile.
    return jax.jit(fwd, donate_argnums=(3,))


# ----------------------------- pure-JAX reference (for correctness check) -----------------------------

def _ref_rms(x, w, eps):
    return (x * jax.lax.rsqrt(jnp.mean(x * x, axis=-1, keepdims=True) + eps)) * w


def ref_forward(params, tokens, start_pos, caches, cfg, cos_full, sin_full):
    B, S = tokens.shape
    D = cfg["hidden_size"]
    H = cfg["num_attention_heads"]
    KVH = cfg["num_key_value_heads"]
    hd = D // H
    n_rep = H // KVH
    eps = cfg["rms_norm_eps"]
    Dq, Dkv = H * hd, KVH * hd

    h = params["embed"][tokens]
    cos = cos_full[start_pos:start_pos + S]
    sin = sin_full[start_pos:start_pos + S]

    for li, lp in enumerate(params["layers"]):
        ck, cv = caches[li]
        x = _ref_rms(h, lp["input_ln"], eps).reshape(B * S, D)
        qkv = x @ lp["wqkv"].astype(jnp.float32) + lp["bqkv"]
        xq = qkv[:, :Dq].reshape(B, S, H, hd)
        xk = qkv[:, Dq:Dq + Dkv].reshape(B, S, KVH, hd)
        xv = qkv[:, Dq + Dkv:].reshape(B, S, KVH, hd)
        xq = apply_rope(xq, cos, sin)
        xk = apply_rope(xk, cos, sin)
        ck = jax.lax.dynamic_update_slice(
            ck, jnp.transpose(xk, (0, 2, 1, 3)).astype(ck.dtype), (0, 0, start_pos, 0))
        cv = jax.lax.dynamic_update_slice(
            cv, jnp.transpose(xv, (0, 2, 1, 3)).astype(cv.dtype), (0, 0, start_pos, 0))
        T = start_pos + S
        kf = ck[:B, :, :T, :].astype(jnp.float32)            # (B, KVH, T, hd)
        vf = cv[:B, :, :T, :].astype(jnp.float32)
        q4 = xq.reshape(B, KVH, n_rep, hd)
        scores = jnp.einsum("bgrd,bgtd->bgrt", q4, kf) / math.sqrt(hd)
        probs = jax.nn.softmax(scores, axis=-1)
        out = jnp.einsum("bgrt,bgtd->bgrd", probs, vf).reshape(B, H * hd)
        h = h + (out @ lp["wo"].astype(jnp.float32)).reshape(B, S, D)
        x2 = _ref_rms(h, lp["post_ln"], eps).reshape(B * S, D)
        g = x2 @ lp["wg"].astype(jnp.float32)
        u = x2 @ lp["wu"].astype(jnp.float32)
        h = h + (((g * jax.nn.sigmoid(g)) * u) @ lp["wd"].astype(jnp.float32)).reshape(B, S, D)
    return _ref_rms(h, params["norm"], eps)


# ----------------------------- main -----------------------------

if __name__ == "__main__":
    cfg = dict(
        hidden_size=128,
        num_hidden_layers=2,
        num_attention_heads=4,
        num_key_value_heads=2,
        vocab_size=256,
        intermediate_size=256,
        rms_norm_eps=1e-6,
        rope_theta=1_000_000.0,
        max_batch_size=2,
        max_position_embeddings=32,
    )
    B, S = 2, 1
    start_pos = 5
    KVH = cfg["num_key_value_heads"]
    hd = cfg["hidden_size"] // cfg["num_attention_heads"]

    key = jax.random.PRNGKey(0)
    kp, kt = jax.random.split(key)
    params = init_params(kp, cfg)
    tokens = jax.random.randint(kt, (B, S), 0, cfg["vocab_size"], dtype=jnp.int32)

    def make_caches():
        shape = (cfg["max_batch_size"], KVH, cfg["max_position_embeddings"], hd)
        return [(jnp.zeros(shape, jnp.bfloat16), jnp.zeros(shape, jnp.bfloat16))
                for _ in range(cfg["num_hidden_layers"])]

    # RoPE table computed once (matches the torch module's self.freqs_complex buffer)
    cos_full, sin_full = precompute_freqs(hd, cfg["max_position_embeddings"] * 2,
                                          cfg["rope_theta"])

    # pure-JAX reference on its own (non-donated) cache copy
    ref = jax.block_until_ready(
        ref_forward(params, tokens, start_pos, make_caches(), cfg, cos_full, sin_full))

    forward = make_model_forward(cfg, cos_full, sin_full)
    out, _ = forward(params, tokens, jnp.array(start_pos, dtype=jnp.int32), make_caches())
    out = jax.block_until_ready(out)

    assert out.shape == (B, S, cfg["hidden_size"])
    assert bool(jnp.all(jnp.isfinite(out)))
    # bf16 x bf16 MXU matmuls (f32 accumulate) vs the f32 reference -> slightly looser tol
    assert bool(jnp.allclose(out, ref, rtol=2e-2, atol=2e-2)), "mismatch vs JAX reference"

    print("KERNEL_OK")
</pallas_src>

<mosaic_0001>
module attributes {stable_mosaic.version = 11 : i64} {
  func.func @_rms_qkv_kernel(%arg0: i32, %arg1: memref<2x128xf32, #tpu.memory_space<vmem>>, %arg2: memref<1x128xf32, #tpu.memory_space<vmem>>, %arg3: memref<128x256xbf16, #tpu.memory_space<vmem>>, %arg4: memref<1x256xf32, #tpu.memory_space<vmem>>, %arg5: memref<2x256xf32, #tpu.memory_space<vmem>>) attributes {dimension_semantics = [#tpu.dimension_semantics<parallel>], iteration_bounds = array<i64: 1>, scalar_prefetch = 0 : i64, scratch_operands = 0 : i64, tpu.core_type = #tpu.core_type<tc>, window_params = [{pipeline_mode = #tpu.pipeline_mode<synchronous>, transform_indices = @transform_0, window_bounds = array<i64: 2, 128>}, {pipeline_mode = #tpu.pipeline_mode<synchronous>, transform_indices = @transform_1, window_bounds = array<i64: 1, 128>}, {transform_indices = @transform_2, window_bounds = array<i64: 128, 256>}, {transform_indices = @transform_3, window_bounds = array<i64: 1, 256>}, {transform_indices = @transform_4, window_bounds = array<i64: 2, 256>}]} {
    %c0 = arith.constant 0 : index
    %c0_0 = arith.constant 0 : index
    %0 = vector.load %arg1[%c0, %c0_0] : memref<2x128xf32, #tpu.memory_space<vmem>>, vector<2x128xf32>
    %1 = arith.mulf %0, %0 : vector<2x128xf32>
    %cst = arith.constant dense<0.000000e+00> : vector<2xf32>
    %2 = vector.multi_reduction <add>, %1, %cst [1] : vector<2x128xf32> to vector<2xf32>
    %3 = vector.shape_cast %2 : vector<2xf32> to vector<2x1xf32>
    %cst_1 = arith.constant 1.280000e+02 : f32
    %4 = vector.broadcast %cst_1 : f32 to vector<2x1xf32>
    %5 = arith.divf %3, %4 : vector<2x1xf32>
    %cst_2 = arith.constant 9.99999997E-7 : f32
    %6 = vector.broadcast %cst_2 : f32 to vector<2x1xf32>
    %7 = arith.addf %5, %6 : vector<2x1xf32>
    %8 = math.rsqrt %7 : vector<2x1xf32>
    %9 = vector.broadcast %8 : vector<2x1xf32> to vector<2x128xf32>
    %10 = arith.mulf %0, %9 : vector<2x128xf32>
    %c0_3 = arith.constant 0 : index
    %c0_4 = arith.constant 0 : index
    %11 = vector.load %arg2[%c0_3, %c0_4] : memref<1x128xf32, #tpu.memory_space<vmem>>, vector<1x128xf32>
    %12 = vector.broadcast %11 : vector<1x128xf32> to vector<2x128xf32>
    %13 = arith.mulf %10, %12 : vector<2x128xf32>
    %14 = arith.truncf %13 : vector<2x128xf32> to vector<2x128xbf16>
    %c0_5 = arith.constant 0 : index
    %c0_6 = arith.constant 0 : index
    %15 = vector.load %arg3[%c0_5, %c0_6] : memref<128x256xbf16, #tpu.memory_space<vmem>>, vector<128x256xbf16>
    %cst_7 = arith.constant dense<0.000000e+00> : vector<2x256xf32>
    %16 = tpu.matmul %14, %15, %cst_7 {dimension_numbers = #tpu.dot_dimension_numbers<[1], [0], [0], [1], [0, 0, 1, 1], [], []>} : vector<2x128xbf16>, vector<128x256xbf16>, vector<2x256xf32> -> vector<2x256xf32>
    %c0_8 = arith.constant 0 : index
    %c0_9 = arith.constant 0 : index
    %17 = vector.load %arg4[%c0_8, %c0_9] : memref<1x256xf32, #tpu.memory_space<vmem>>, vector<1x256xf32>
    %18 = vector.broadcast %17 : vector<1x256xf32> to vector<2x256xf32>
    %19 = arith.addf %16, %18 : vector<2x256xf32>
    %c0_10 = arith.constant 0 : index
    %c0_11 = arith.constant 0 : index
    %20 = vector.load %arg5[%c0_10, %c0_11] : memref<2x256xf32, #tpu.memory_space<vmem>>, vector<2x256xf32>
    tpu.vector_store %arg5[%c0_10, %c0_11], %19 {strides = array<i32>} : memref<2x256xf32, #tpu.memory_space<vmem>>, vector<2x256xf32>,
    return
  }
  func.func @transform_0(%arg0: i32) -> (i32, i32) {
    %c0_i32 = arith.constant 0 : i32
    %c0_i32_0 = arith.constant 0 : i32
    %c0_i32_1 = arith.constant 0 : i32
    return %c0_i32, %c0_i32_0 : i32, i32
  }
  func.func @transform_1(%arg0: i32) -> (i32, i32) {
    %c0_i32 = arith.constant 0 : i32
    %c0_i32_0 = arith.constant 0 : i32
    %c0_i32_1 = arith.constant 0 : i32
    return %c0_i32, %c0_i32_0 : i32, i32
  }
  func.func @transform_2(%arg0: i32) -> (i32, i32) {
    %c0_i32 = arith.constant 0 : i32
    %c0_i32_0 = arith.constant 0 : i32
    return %c0_i32, %arg0 : i32, i32
  }
  func.func @transform_3(%arg0: i32) -> (i32, i32) {
    %c0_i32 = arith.constant 0 : i32
    %c0_i32_0 = arith.constant 0 : i32
    return %c0_i32, %arg0 : i32, i32
  }
  func.func @transform_4(%arg0: i32) -> (i32, i32) {
    %c0_i32 = arith.constant 0 : i32
    %c0_i32_0 = arith.constant 0 : i32
    return %c0_i32, %arg0 : i32, i32
  }
}

module attributes {stable_mosaic.version = 11 : i64} {
  func.func @_gqa_attn_kernel(%arg0: i32, %arg1: i32, %arg2: memref<1xi32, #tpu.memory_space<smem>>, %arg3: memref<1x1x2x32xf32, #tpu.memory_space<vmem>>, %arg4: memref<1x1x32x32xbf16, #tpu.memory_space<vmem>>, %arg5: memref<1x1x32x32xbf16, #tpu.memory_space<vmem>>, %arg6: memref<1x1x2x32xf32, #tpu.memory_space<vmem>>) attributes {dimension_semantics = [#tpu.dimension_semantics<parallel>, #tpu.dimension_semantics<parallel>], iteration_bounds = array<i64: 2, 2>, scalar_prefetch = 1 : i64, scratch_operands = 0 : i64, tpu.core_type = #tpu.core_type<tc>, window_params = [{transform_indices = @transform_0, window_bounds = array<i64: 1, 1, 2, 32>}, {transform_indices = @transform_1, window_bounds = array<i64: 1, 1, 32, 32>}, {transform_indices = @transform_2, window_bounds = array<i64: 1, 1, 32, 32>}, {transform_indices = @transform_3, window_bounds = array<i64: 1, 1, 2, 32>}]} {
    %c0 = arith.constant 0 : index
    %c0_0 = arith.constant 0 : index
    %c0_1 = arith.constant 0 : index
    %c0_2 = arith.constant 0 : index
    %0 = vector.load %arg3[%c0, %c0_0, %c0_1, %c0_2] : memref<1x1x2x32xf32, #tpu.memory_space<vmem>>, vector<1x1x2x32xf32>
    %1 = vector.shape_cast %0 : vector<1x1x2x32xf32> to vector<2x32xf32>
    %2 = arith.truncf %1 : vector<2x32xf32> to vector<2x32xbf16>
    %c0_3 = arith.constant 0 : index
    %c0_4 = arith.constant 0 : index
    %c0_5 = arith.constant 0 : index
    %c0_6 = arith.constant 0 : index
    %3 = vector.load %arg4[%c0_3, %c0_4, %c0_5, %c0_6] : memref<1x1x32x32xbf16, #tpu.memory_space<vmem>>, vector<1x1x32x32xbf16>
    %4 = vector.shape_cast %3 : vector<1x1x32x32xbf16> to vector<32x32xbf16>
    %c0_7 = arith.constant 0 : index
    %c0_8 = arith.constant 0 : index
    %c0_9 = arith.constant 0 : index
    %c0_10 = arith.constant 0 : index
    %5 = vector.load %arg5[%c0_7, %c0_8, %c0_9, %c0_10] : memref<1x1x32x32xbf16, #tpu.memory_space<vmem>>, vector<1x1x32x32xbf16>
    %6 = vector.shape_cast %5 : vector<1x1x32x32xbf16> to vector<32x32xbf16>
    %cst = arith.constant dense<0.000000e+00> : vector<2x32xf32>
    %7 = tpu.matmul %2, %4, %cst {dimension_numbers = #tpu.dot_dimension_numbers<[1], [1], [0], [0], [0, 0, 1, 0], [], []>} : vector<2x32xbf16>, vector<32x32xbf16>, vector<2x32xf32> -> vector<2x32xf32>
    %cst_11 = arith.constant 0.176776692 : f32
    %8 = vector.broadcast %cst_11 : f32 to vector<2x32xf32>
    %9 = arith.mulf %7, %8 : vector<2x32xf32>
    %c0_12 = arith.constant 0 : index
    %10 = memref.load %arg2[%c0_12] : memref<1xi32, #tpu.memory_space<smem>>
    %11 = tpu.iota {dimensions = array<i32: 1>} : vector<2x32xi32>
    %12 = vector.broadcast %10 : i32 to vector<2x32xi32>
    %13 = arith.cmpi slt, %11, %12 : vector<2x32xi32>
    %cst_13 = arith.constant 0xFF800000 : f32
    %14 = vector.broadcast %cst_13 : f32 to vector<2x32xf32>
    %15 = arith.select %13, %9, %14 : vector<2x32xi1>, vector<2x32xf32>
    %cst_14 = arith.constant dense<0xFF800000> : vector<2xf32>
    %16 = vector.multi_reduction <maximumf>, %15, %cst_14 [1] : vector<2x32xf32> to vector<2xf32>
    %17 = vector.shape_cast %16 : vector<2xf32> to vector<2x1xf32>
    %18 = vector.broadcast %17 : vector<2x1xf32> to vector<2x32xf32>
    %19 = arith.subf %15, %18 : vector<2x32xf32>
    %20 = math.exp %19 : vector<2x32xf32>
    %cst_15 = arith.constant dense<0.000000e+00> : vector<2xf32>
    %21 = vector.multi_reduction <add>, %20, %cst_15 [1] : vector<2x32xf32> to vector<2xf32>
    %22 = vector.shape_cast %21 : vector<2xf32> to vector<2x1xf32>
    %23 = arith.truncf %20 : vector<2x32xf32> to vector<2x32xbf16>
    %cst_16 = arith.constant dense<0.000000e+00> : vector<2x32xf32>
    %24 = tpu.matmul %23, %6, %cst_16 {dimension_numbers = #tpu.dot_dimension_numbers<[1], [0], [0], [1], [0, 0, 1, 1], [], []>} : vector<2x32xbf16>, vector<32x32xbf16>, vector<2x32xf32> -> vector<2x32xf32>
    %25 = tpu.reciprocal %22 {approx = true} : vector<2x1xf32> -> vector<2x1xf32>
    %26 = vector.broadcast %25 : vector<2x1xf32> to vector<2x32xf32>
    %27 = arith.mulf %24, %26 : vector<2x32xf32>
    %c0_17 = arith.constant 0 : index
    %c0_18 = arith.constant 0 : index
    %c0_19 = arith.constant 0 : index
    %c0_20 = arith.constant 0 : index
    %28 = vector.load %arg6[%c0_17, %c0_18, %c0_19, %c0_20] : memref<1x1x2x32xf32, #tpu.memory_space<vmem>>, vector<1x1x2x32xf32>
    %29 = vector.shape_cast %28 : vector<1x1x2x32xf32> to vector<2x32xf32>
    %30 = vector.shape_cast %27 : vector<2x32xf32> to vector<1x1x2x32xf32>
    tpu.vector_store %arg6[%c0_17, %c0_18, %c0_19, %c0_20], %30 {strides = array<i32>} : memref<1x1x2x32xf32, #tpu.memory_space<vmem>>, vector<1x1x2x32xf32>,
    return
  }
  func.func @transform_0(%arg0: i32, %arg1: i32, %arg2: memref<1xi32, #tpu.memory_space<smem>>) -> (i32, i32, i32, i32) {
    %c0_i32 = arith.constant 0 : i32
    %c0_i32_0 = arith.constant 0 : i32
    %c0_i32_1 = arith.constant 0 : i32
    return %arg0, %arg1, %c0_i32, %c0_i32_0 : i32, i32, i32, i32
  }
  func.func @transform_1(%arg0: i32, %arg1: i32, %arg2: memref<1xi32, #tpu.memory_space<smem>>) -> (i32, i32, i32, i32) {
    %c0_i32 = arith.constant 0 : i32
    %c0_i32_0 = arith.constant 0 : i32
    %c0_i32_1 = arith.constant 0 : i32
    return %arg0, %arg1, %c0_i32, %c0_i32_0 : i32, i32, i32, i32
  }
  func.func @transform_2(%arg0: i32, %arg1: i32, %arg2: memref<1xi32, #tpu.memory_space<smem>>) -> (i32, i32, i32, i32) {
    %c0_i32 = arith.constant 0 : i32
    %c0_i32_0 = arith.constant 0 : i32
    %c0_i32_1 = arith.constant 0 : i32
    return %arg0, %arg1, %c0_i32, %c0_i32_0 : i32, i32, i32, i32
  }
  func.func @transform_3(%arg0: i32, %arg1: i32, %arg2: memref<1xi32, #tpu.memory_space<smem>>) -> (i32, i32, i32, i32) {
    %c0_i32 = arith.constant 0 : i32
    %c0_i32_0 = arith.constant 0 : i32
    %c0_i32_1 = arith.constant 0 : i32
    return %arg0, %arg1, %c0_i32, %c0_i32_0 : i32, i32, i32, i32
  }
}

module attributes {stable_mosaic.version = 11 : i64} {
  func.func @_matmul_kernel(%arg0: i32, %arg1: memref<2x128xf32, #tpu.memory_space<vmem>>, %arg2: memref<128x128xbf16, #tpu.memory_space<vmem>>, %arg3: memref<2x128xf32, #tpu.memory_space<vmem>>) attributes {dimension_semantics = [#tpu.dimension_semantics<parallel>], iteration_bounds = array<i64: 1>, scalar_prefetch = 0 : i64, scratch_operands = 0 : i64, tpu.core_type = #tpu.core_type<tc>, window_params = [{pipeline_mode = #tpu.pipeline_mode<synchronous>, transform_indices = @transform_0, window_bounds = array<i64: 2, 128>}, {transform_indices = @transform_1, window_bounds = array<i64: 128, 128>}, {transform_indices = @transform_2, window_bounds = array<i64: 2, 128>}]} {
    %c0 = arith.constant 0 : index
    %c0_0 = arith.constant 0 : index
    %0 = vector.load %arg1[%c0, %c0_0] : memref<2x128xf32, #tpu.memory_space<vmem>>, vector<2x128xf32>
    %1 = arith.truncf %0 : vector<2x128xf32> to vector<2x128xbf16>
    %c0_1 = arith.constant 0 : index
    %c0_2 = arith.constant 0 : index
    %2 = vector.load %arg2[%c0_1, %c0_2] : memref<128x128xbf16, #tpu.memory_space<vmem>>, vector<128x128xbf16>
    %cst = arith.constant dense<0.000000e+00> : vector<2x128xf32>
    %3 = tpu.matmul %1, %2, %cst {dimension_numbers = #tpu.dot_dimension_numbers<[1], [0], [0], [1], [0, 0, 1, 1], [], []>} : vector<2x128xbf16>, vector<128x128xbf16>, vector<2x128xf32> -> vector<2x128xf32>
    %c0_3 = arith.constant 0 : index
    %c0_4 = arith.constant 0 : index
    %4 = vector.load %arg3[%c0_3, %c0_4] : memref<2x128xf32, #tpu.memory_space<vmem>>, vector<2x128xf32>
    tpu.vector_store %arg3[%c0_3, %c0_4], %3 {strides = array<i32>} : memref<2x128xf32, #tpu.memory_space<vmem>>, vector<2x128xf32>,
    return
  }
  func.func @transform_0(%arg0: i32) -> (i32, i32) {
    %c0_i32 = arith.constant 0 : i32
    %c0_i32_0 = arith.constant 0 : i32
    %c0_i32_1 = arith.constant 0 : i32
    return %c0_i32, %c0_i32_0 : i32, i32
  }
  func.func @transform_1(%arg0: i32) -> (i32, i32) {
    %c0_i32 = arith.constant 0 : i32
    %c0_i32_0 = arith.constant 0 : i32
    return %c0_i32, %arg0 : i32, i32
  }
  func.func @transform_2(%arg0: i32) -> (i32, i32) {
    %c0_i32 = arith.constant 0 : i32
    %c0_i32_0 = arith.constant 0 : i32
    return %c0_i32, %arg0 : i32, i32
  }
}

module attributes {stable_mosaic.version = 11 : i64} {
  func.func @_rms_mlp_kernel(%arg0: i32, %arg1: i32, %arg2: memref<2x128xf32, #tpu.memory_space<vmem>>, %arg3: memref<1x128xf32, #tpu.memory_space<vmem>>, %arg4: memref<128x256xbf16, #tpu.memory_space<vmem>>, %arg5: memref<128x256xbf16, #tpu.memory_space<vmem>>, %arg6: memref<256x128xbf16, #tpu.memory_space<vmem>>, %arg7: memref<2x128xf32, #tpu.memory_space<vmem>>, %arg8: memref<2x128xbf16, #tpu.memory_space<vmem>>) attributes {dimension_semantics = [#tpu.dimension_semantics<parallel>, #tpu.dimension_semantics<arbitrary>], iteration_bounds = array<i64: 1, 1>, scalar_prefetch = 0 : i64, scratch_operands = 1 : i64, tpu.core_type = #tpu.core_type<tc>, window_params = [{pipeline_mode = #tpu.pipeline_mode<synchronous>, transform_indices = @transform_0, window_bounds = array<i64: 2, 128>}, {pipeline_mode = #tpu.pipeline_mode<synchronous>, transform_indices = @transform_1, window_bounds = array<i64: 1, 128>}, {transform_indices = @transform_2, window_bounds = array<i64: 128, 256>}, {transform_indices = @transform_3, window_bounds = array<i64: 128, 256>}, {transform_indices = @transform_4, window_bounds = array<i64: 256, 128>}, {transform_indices = @transform_5, window_bounds = array<i64: 2, 128>}]} {
    %c0_i32 = arith.constant 0 : i32
    %0 = arith.cmpi eq, %arg1, %c0_i32 : i32
    %1 = arith.extui %0 : i1 to i32
    %c0_i32_0 = arith.constant 0 : i32
    %2 = arith.cmpi ne, %1, %c0_i32_0 : i32
    scf.if %2 {
      %c0_15 = arith.constant 0 : index
      %c0_16 = arith.constant 0 : index
      %21 = vector.load %arg2[%c0_15, %c0_16] : memref<2x128xf32, #tpu.memory_space<vmem>>, vector<2x128xf32>
      %22 = arith.mulf %21, %21 : vector<2x128xf32>
      %cst_17 = arith.constant dense<0.000000e+00> : vector<2xf32>
      %23 = vector.multi_reduction <add>, %22, %cst_17 [1] : vector<2x128xf32> to vector<2xf32>
      %24 = vector.shape_cast %23 : vector<2xf32> to vector<2x1xf32>
      %cst_18 = arith.constant 1.280000e+02 : f32
      %25 = vector.broadcast %cst_18 : f32 to vector<2x1xf32>
      %26 = arith.divf %24, %25 : vector<2x1xf32>
      %cst_19 = arith.constant 9.99999997E-7 : f32
      %27 = vector.broadcast %cst_19 : f32 to vector<2x1xf32>
      %28 = arith.addf %26, %27 : vector<2x1xf32>
      %29 = math.rsqrt %28 : vector<2x1xf32>
      %30 = vector.broadcast %29 : vector<2x1xf32> to vector<2x128xf32>
      %31 = arith.mulf %21, %30 : vector<2x128xf32>
      %c0_20 = arith.constant 0 : index
      %c0_21 = arith.constant 0 : index
      %32 = vector.load %arg3[%c0_20, %c0_21] : memref<1x128xf32, #tpu.memory_space<vmem>>, vector<1x128xf32>
      %33 = vector.broadcast %32 : vector<1x128xf32> to vector<2x128xf32>
      %34 = arith.mulf %31, %33 : vector<2x128xf32>
      %35 = arith.truncf %34 : vector<2x128xf32> to vector<2x128xbf16>
      %c0_22 = arith.constant 0 : index
      %c0_23 = arith.constant 0 : index
      %36 = vector.load %arg8[%c0_22, %c0_23] : memref<2x128xbf16, #tpu.memory_space<vmem>>, vector<2x128xbf16>
      tpu.vector_store %arg8[%c0_22, %c0_23], %35 {strides = array<i32>} : memref<2x128xbf16, #tpu.memory_space<vmem>>, vector<2x128xbf16>,
      %cst_24 = arith.constant 0.000000e+00 : f32
      %37 = vector.broadcast %cst_24 : f32 to vector<2x128xf32>
      %c0_25 = arith.constant 0 : index
      %c0_26 = arith.constant 0 : index
      %38 = vector.load %arg7[%c0_25, %c0_26] : memref<2x128xf32, #tpu.memory_space<vmem>>, vector<2x128xf32>
      tpu.vector_store %arg7[%c0_25, %c0_26], %37 {strides = array<i32>} : memref<2x128xf32, #tpu.memory_space<vmem>>, vector<2x128xf32>,
    } else {
    }
    %c0 = arith.constant 0 : index
    %c0_1 = arith.constant 0 : index
    %3 = vector.load %arg8[%c0, %c0_1] : memref<2x128xbf16, #tpu.memory_space<vmem>>, vector<2x128xbf16>
    %c0_2 = arith.constant 0 : index
    %c0_3 = arith.constant 0 : index
    %4 = vector.load %arg4[%c0_2, %c0_3] : memref<128x256xbf16, #tpu.memory_space<vmem>>, vector<128x256xbf16>
    %cst = arith.constant dense<0.000000e+00> : vector<2x256xf32>
    %5 = tpu.matmul %3, %4, %cst {dimension_numbers = #tpu.dot_dimension_numbers<[1], [0], [0], [1], [0, 0, 1, 1], [], []>} : vector<2x128xbf16>, vector<128x256xbf16>, vector<2x256xf32> -> vector<2x256xf32>
    %c0_4 = arith.constant 0 : index
    %c0_5 = arith.constant 0 : index
    %6 = vector.load %arg5[%c0_4, %c0_5] : memref<128x256xbf16, #tpu.memory_space<vmem>>, vector<128x256xbf16>
    %cst_6 = arith.constant dense<0.000000e+00> : vector<2x256xf32>
    %7 = tpu.matmul %3, %6, %cst_6 {dimension_numbers = #tpu.dot_dimension_numbers<[1], [0], [0], [1], [0, 0, 1, 1], [], []>} : vector<2x128xbf16>, vector<128x256xbf16>, vector<2x256xf32> -> vector<2x256xf32>
    %8 = arith.negf %5 : vector<2x256xf32>
    %9 = math.exp %8 : vector<2x256xf32>
    %cst_7 = arith.constant 1.000000e+00 : f32
    %10 = vector.broadcast %cst_7 : f32 to vector<2x256xf32>
    %11 = arith.addf %10, %9 : vector<2x256xf32>
    %12 = arith.divf %10, %11 : vector<2x256xf32>
    %13 = arith.mulf %5, %12 : vector<2x256xf32>
    %14 = arith.mulf %13, %7 : vector<2x256xf32>
    %15 = arith.truncf %14 : vector<2x256xf32> to vector<2x256xbf16>
    %c0_8 = arith.constant 0 : index
    %c0_9 = arith.constant 0 : index
    %16 = vector.load %arg7[%c0_8, %c0_9] : memref<2x128xf32, #tpu.memory_space<vmem>>, vector<2x128xf32>
    %c0_10 = arith.constant 0 : index
    %c0_11 = arith.constant 0 : index
    %17 = vector.load %arg6[%c0_10, %c0_11] : memref<256x128xbf16, #tpu.memory_space<vmem>>, vector<256x128xbf16>
    %cst_12 = arith.constant dense<0.000000e+00> : vector<2x128xf32>
    %18 = tpu.matmul %15, %17, %cst_12 {dimension_numbers = #tpu.dot_dimension_numbers<[1], [0], [0], [1], [0, 0, 1, 1], [], []>} : vector<2x256xbf16>, vector<256x128xbf16>, vector<2x128xf32> -> vector<2x128xf32>
    %19 = arith.addf %16, %18 : vector<2x128xf32>
    %c0_13 = arith.constant 0 : index
    %c0_14 = arith.constant 0 : index
    %20 = vector.load %arg7[%c0_13, %c0_14] : memref<2x128xf32, #tpu.memory_space<vmem>>, vector<2x128xf32>
    tpu.vector_store %arg7[%c0_13, %c0_14], %19 {strides = array<i32>} : memref<2x128xf32, #tpu.memory_space<vmem>>, vector<2x128xf32>,
    return
  }
  func.func @transform_0(%arg0: i32, %arg1: i32) -> (i32, i32) {
    %c0_i32 = arith.constant 0 : i32
    %c0_i32_0 = arith.constant 0 : i32
    %c0_i32_1 = arith.constant 0 : i32
    return %c0_i32, %c0_i32_0 : i32, i32
  }
  func.func @transform_1(%arg0: i32, %arg1: i32) -> (i32, i32) {
    %c0_i32 = arith.constant 0 : i32
    %c0_i32_0 = arith.constant 0 : i32
    %c0_i32_1 = arith.constant 0 : i32
    return %c0_i32, %c0_i32_0 : i32, i32
  }
  func.func @transform_2(%arg0: i32, %arg1: i32) -> (i32, i32) {
    %c0_i32 = arith.constant 0 : i32
    %c0_i32_0 = arith.constant 0 : i32
    return %c0_i32, %arg1 : i32, i32
  }
  func.func @transform_3(%arg0: i32, %arg1: i32) -> (i32, i32) {
    %c0_i32 = arith.constant 0 : i32
    %c0_i32_0 = arith.constant 0 : i32
    return %c0_i32, %arg1 : i32, i32
  }
  func.func @transform_4(%arg0: i32, %arg1: i32) -> (i32, i32) {
    %c0_i32 = arith.constant 0 : i32
    return %arg1, %arg0 : i32, i32
  }
  func.func @transform_5(%arg0: i32, %arg1: i32) -> (i32, i32) {
    %c0_i32 = arith.constant 0 : i32
    %c0_i32_0 = arith.constant 0 : i32
    return %c0_i32, %arg0 : i32, i32
  }
}

module attributes {stable_mosaic.version = 11 : i64} {
  func.func @_rmsnorm_kernel(%arg0: memref<2x128xf32, #tpu.memory_space<vmem>>, %arg1: memref<1x128xf32, #tpu.memory_space<vmem>>, %arg2: memref<2x128xf32, #tpu.memory_space<vmem>>) attributes {dimension_semantics = [], scalar_prefetch = 0 : i64, scratch_operands = 0 : i64, tpu.core_type = #tpu.core_type<tc>} {
    %c0 = arith.constant 0 : index
    %c0_0 = arith.constant 0 : index
    %0 = vector.load %arg0[%c0, %c0_0] : memref<2x128xf32, #tpu.memory_space<vmem>>, vector<2x128xf32>
    %1 = arith.mulf %0, %0 : vector<2x128xf32>
    %cst = arith.constant dense<0.000000e+00> : vector<2xf32>
    %2 = vector.multi_reduction <add>, %1, %cst [1] : vector<2x128xf32> to vector<2xf32>
    %3 = vector.shape_cast %2 : vector<2xf32> to vector<2x1xf32>
    %cst_1 = arith.constant 1.280000e+02 : f32
    %4 = vector.broadcast %cst_1 : f32 to vector<2x1xf32>
    %5 = arith.divf %3, %4 : vector<2x1xf32>
    %cst_2 = arith.constant 9.99999997E-7 : f32
    %6 = vector.broadcast %cst_2 : f32 to vector<2x1xf32>
    %7 = arith.addf %5, %6 : vector<2x1xf32>
    %8 = math.rsqrt %7 : vector<2x1xf32>
    %9 = vector.broadcast %8 : vector<2x1xf32> to vector<2x128xf32>
    %10 = arith.mulf %0, %9 : vector<2x128xf32>
    %c0_3 = arith.constant 0 : index
    %c0_4 = arith.constant 0 : index
    %11 = vector.load %arg1[%c0_3, %c0_4] : memref<1x128xf32, #tpu.memory_space<vmem>>, vector<1x128xf32>
    %12 = vector.broadcast %11 : vector<1x128xf32> to vector<2x128xf32>
    %13 = arith.mulf %10, %12 : vector<2x128xf32>
    %c0_5 = arith.constant 0 : index
    %c0_6 = arith.constant 0 : index
    %14 = vector.load %arg2[%c0_5, %c0_6] : memref<2x128xf32, #tpu.memory_space<vmem>>, vector<2x128xf32>
    tpu.vector_store %arg2[%c0_5, %c0_6], %13 {strides = array<i32>} : memref<2x128xf32, #tpu.memory_space<vmem>>, vector<2x128xf32>,
    return
  }
}

</mosaic_0001>

<bundles_post_ra>
// kernel: fwd.9
= control target key start
LH: loop header
LB: loop body
LE: loop exit
PB: predicated region body
PF: predicated region fallthrough
CT: control target
= control target key end

     0   :  { %9 = vsyncpa [#allocation3], 0  ;;  %s529_s0 = inlined_call_operand.hbm [shape: f32[2,128], index: 0, kind: input, shape index: {}]   ;;  %s530_s1 = inlined_call_operand.hbm [shape: f32[1,128], index: 1, kind: input, shape index: {}]   ;;  %s531_s2 = inlined_call_operand.hbm [shape: bf16[128,256], index: 2, kind: input, shape index: {}]   ;;  %s532_s3 = inlined_call_operand.hbm [shape: f32[1,256], index: 3, kind: input, shape index: {}]   ;;  %s533_s4 = inlined_call_operand.hbm [shape: f32[2,256], index: 4, kind: output, shape index: {}]  }
   0x1   :  { %10 = vsyncpa [#allocation6], 0 }
   0x2   :  { %11 = vsyncpa [#allocation9], 0 }
   0x3   :  { %12 = vsyncpa [#allocation4], 0  ;;  %s436_s15 = smov [#allocation5]   ;;  %s437_s17 = smov [#allocation2]  }
   0x4   :  { %s29_s16 = sshll.u32 %s436_s15, 4  ;;  %s19_s18 = sshll.u32 %s437_s17, 4  ;;  %s30_s16 = int_to_ptr.vmem [resolvable:$true] %s29_s16  ;;  %s20_s18 = int_to_ptr.vmem [resolvable:$true] %s19_s18 }
   0x5   :  { %s318_s21 = scalar_lea.hbm %s530_s1, 16 }
   0x6   :  { %p319_p0 = scmp.ne.s32.totalorder %s530_s1, %s318_s21  ;;  %p322_p1 = scmp.lt.u32.totalorder %s318_s21, %s530_s1 }
   0x8   :  { %p324_p2 = pnand %p322_p1, %p319_p0 }
   0xa   :  { %327 = shalt.err (!%p324_p2)
}
   0xb   :  { %s328_s26 = scalar_lea.vmem %s30_s16, 16  ;;  %s332_s27 = scalar_lea.vmem %s30_s16, 32 }
   0xc   :  { %p329_p3 = scmp.ne.s32.totalorder %s30_s16, %s328_s26  ;;  %p333_p4 = scmp.lt.s32.totalorder %s30_s16, %s30_s16 }
   0xd   :  { %p334_p5 = scmp.lt.s32.totalorder %s332_s27, %s328_s26 }
   0xf   :  { %p335_p6 = por %p334_p5, %p333_p4 }
  0x11   :  { %p336_p7 = pnand %p335_p6, %p329_p3 }
  0x13   :  { %339 = shalt.err (!%p336_p7)
}
  0x14   :  { %32 = dma.hbm_to_vmem [thread:$0]  %s530_s1, 16, %s30_s16, [#allocation6]  }
  0x15   :  { %s340_s6 = scalar_lea.hbm %s529_s0, 32 }
  0x16   :  { %p341_p8 = scmp.ne.s32.totalorder %s529_s0, %s340_s6  ;;  %p344_p9 = scmp.lt.u32.totalorder %s340_s6, %s529_s0 }
  0x18   :  { %p346_p10 = pnand %p344_p9, %p341_p8 }
  0x1a   :  { %349 = shalt.err (!%p346_p10)
}
  0x1b   :  { %s350_s11 = scalar_lea.vmem %s20_s18, 32  ;;  %p355_p12 = scmp.lt.s32.totalorder %s20_s18, %s20_s18 }
  0x1c   :  { %p351_p11 = scmp.ne.s32.totalorder %s20_s18, %s350_s11  ;;  %p356_p13 = scmp.lt.s32.totalorder %s350_s11, %s350_s11 }
  0x1e   :  { %p357_p0 = por %p356_p13, %p355_p12 }
  0x20   :  { %p358_p1 = pnand %p357_p0, %p351_p11 }
  0x22   :  { %361 = shalt.err (!%p358_p1)
}
  0x23   :  { %22 = dma.hbm_to_vmem [thread:$0]  %s529_s0, 32, %s20_s18, [#allocation3]  }
  0x24   :  { %s438_s13 = smov [#allocation7]   ;;  %s362_s17 = scalar_lea.hbm %s531_s2, 2048 }
  0x25   :  { %s38_s14 = sshll.u32 %s438_s13, 4  ;;  %p363_p2 = scmp.ne.s32.totalorder %s531_s2, %s362_s17  ;;  %s39_s14 = int_to_ptr.vmem [resolvable:$true] %s38_s14 }
  0x26   :  { %p366_p3 = scmp.lt.u32.totalorder %s362_s17, %s531_s2 }
  0x28   :  { %p368_p4 = pnand %p366_p3, %p363_p2 }
  0x2a   :  { %371 = shalt.err (!%p368_p4)
}
  0x2b   :  { %s372_s23 = scalar_lea.vmem %s39_s14, 2048  ;;  %p377_p6 = scmp.lt.s32.totalorder %s39_s14, %s39_s14 }
  0x2c   :  { %p373_p5 = scmp.ne.s32.totalorder %s39_s14, %s372_s23  ;;  %p378_p7 = scmp.lt.s32.totalorder %s372_s23, %s372_s23 }
  0x2e   :  { %p379_p8 = por %p378_p7, %p377_p6 }
  0x30   :  { %p380_p9 = pnand %p379_p8, %p373_p5 }
  0x32   :  { %383 = shalt.err (!%p380_p9)
}
  0x33   :  { %s439_s0 = smov 128   ;;  %s440_s18 = smov 8  }
  0x34   :  { %44 = dma.hbm_to_vmem [thread:$0]  %s531_s2, 2048, %s39_s14, [#allocation6], %s439_s0, %s439_s0, %s440_s18  }
  0x35   :  { %s441_s26 = smov [#allocation8]   ;;  %s384_s30 = scalar_lea.hbm %s532_s3, 32 }
  0x36   :  { %s51_s27 = sshll.u32 %s441_s26, 4  ;;  %p385_p10 = scmp.ne.s32.totalorder %s532_s3, %s384_s30  ;;  %s52_s27 = int_to_ptr.vmem [resolvable:$true] %s51_s27 }
  0x37   :  { %p388_p11 = scmp.lt.u32.totalorder %s384_s30, %s532_s3 }
  0x39   :  { %p390_p12 = pnand %p388_p11, %p385_p10 }
  0x3b   :  { %393 = shalt.err (!%p390_p12)
}
  0x3c   :  { %s394_s9 = scalar_lea.vmem %s52_s27, 32  ;;  %p399_p0 = scmp.lt.s32.totalorder %s52_s27, %s52_s27 }
  0x3d   :  { %p395_p13 = scmp.ne.s32.totalorder %s52_s27, %s394_s9  ;;  %p400_p1 = scmp.lt.s32.totalorder %s394_s9, %s394_s9 }
  0x3f   :  { %p401_p2 = por %p400_p1, %p399_p0 }
  0x41   :  { %p402_p3 = pnand %p401_p2, %p395_p13 }
  0x43   :  { %405 = shalt.err (!%p402_p3)
}
  0x44   :  { %54 = dma.hbm_to_vmem [thread:$0]  %s532_s3, 32, %s52_s27, [#allocation9]  }
  0x45   :  { %428 = dma.done.wait [#allocation3], 32  }
  0x46   :  { %429 = vsyncadd [#allocation3], 4294967264 }
  0x47   :  { %430 = dma.done.wait [#allocation6], 2064  }
  0x48   :  { %431 = vsyncadd [#allocation6], 4294965232 }
  0x49   :  { %432 = dma.done.wait [#allocation9], 32  }
  0x4a   :  { %433 = vsyncadd [#allocation9], 4294967264  ;;  %v68_v0 = vld [vmem:[#allocation2] sm:$0x3]  ;;  %vm70_vm0 = vcmask 1041408   ;;  %v442_v16 = vmov 0   ;;  %v106_v28 = vlaneseq }
  0x4b   :  { %v69_v1 = vmul.f32 %v68_v0, %v68_v0  ;;  %v292_v2 = vld [vmem:[#allocation7 + $0x4] ss:$8 sps:$4 sm:$0xff]   ;;  %v294_v3 = vld [vmem:[#allocation7] ss:$8 sps:$4 sm:$0xff]   ;;  %v295_v4 = vld [vmem:[#allocation7 + $0x14] ss:$8 sps:$4 sm:$0xff]   ;;  %228 = vmatprep.mubr.bf16.mxu0 %v442_v16 }
  0x4c   :  { %196 = vmatprep.subr.bf16.mxu0 %v292_v2  ;;  %v297_v6 = vld [vmem:[#allocation7 + $0x10] ss:$8 sps:$4 sm:$0xff]   ;;  %v298_v7 = vld [vmem:[#allocation7 + $0x24] ss:$8 sps:$4 sm:$0xff]   ;;  %v300_v8 = vld [vmem:[#allocation7 + $0x20] ss:$8 sps:$4 sm:$0xff]  }
  0x4d   :  { %v71_v5 = vsel %vm70_vm0, %v69_v1, 0.0  ;;  %197 = vmatpush1.bf16.msra.mxu0 %v294_v3  ;;  %v301_v9 = vld [vmem:[#allocation7 + $0x34] ss:$8 sps:$4 sm:$0xff]   ;;  %v303_v10 = vld [vmem:[#allocation7 + $0x30] ss:$8 sps:$4 sm:$0xff]   ;;  %v107_v29 = vshrl.u32 %v106_v28, 7 }
  0x4e   :  { %72 = vadd.xlane.f32.xlu0 %v71_v5  ;;  %198 = vmatprep.subr.bf16.mxu0 %v295_v4  ;;  %v304_v11 = vld [vmem:[#allocation7 + $0x44] ss:$8 sps:$4 sm:$0xff]   ;;  %v306_v12 = vld [vmem:[#allocation7 + $0x40] ss:$8 sps:$4 sm:$0xff]   ;;  %v307_v13 = vld [vmem:[#allocation7 + $0x54] ss:$8 sps:$4 sm:$0xff]  }
  0x4f   :  { %v309_v14 = vld [vmem:[#allocation7 + $0x50] ss:$8 sps:$4 sm:$0xff]   ;;  %v310_v15 = vld [vmem:[#allocation7 + $0x64] ss:$8 sps:$4 sm:$0xff]   ;;  %v312_v17 = vld [vmem:[#allocation7 + $0x60] ss:$8 sps:$4 sm:$0xff]  }
  0x50   :  { %v313_v18 = vld [vmem:[#allocation7 + $0x74] ss:$8 sps:$4 sm:$0xff]   ;;  %v315_v19 = vld [vmem:[#allocation7 + $0x70] ss:$8 sps:$4 sm:$0xff]   ;;  %v108_v30 = vsub.s32 0, %v107_v29  ;;  %v112_v32 = vsub.s32 1, %v107_v29 }
  0x51   :  { %199 = vmatpush1.bf16.msra.mxu0 %v297_v6  ;;  %v266_v24 = vld [vmem:[#allocation5] ss:$0 sm:$0xff]  ;;  %v104_v31 = vld [vmem:[#allocation8] sm:$0x3]  ;;  %s443_s3 = smov [#allocation10]  }
  0x52   :  { %200 = vmatprep.subr.bf16.mxu0 %v298_v7  ;;  %v109_v33 = vrot.slane %v104_v31, %v108_v30  ;;  %v113_v34 = vrot.slane %v104_v31, %v112_v32  ;;  %s255_s11 = sshll.u32 %s443_s3, 4  ;;  %s256_s11 = int_to_ptr.vmem [resolvable:$true] %s255_s11 }
  0x53   :  { %s406_s1 = scalar_lea.vmem %s256_s11, 64  ;;  %p411_p5 = scmp.lt.s32.totalorder %s256_s11, %s256_s11 }
  0x54   :  { %p407_p4 = scmp.ne.s32.totalorder %s256_s11, %s406_s1  ;;  %p412_p6 = scmp.lt.s32.totalorder %s406_s1, %s406_s1 }
  0x55   :  { %201 = vmatpush1.bf16.msra.mxu0 %v300_v8 }
  0x56   :  { %202 = vmatprep.subr.bf16.mxu0 %v301_v9  ;;  %p413_p7 = por %p412_p6, %p411_p5 }
  0x58   :  { %p414_p8 = pnand %p413_p7, %p407_p4 }
  0x59   :  { %203 = vmatpush1.bf16.msra.mxu0 %v303_v10 }
  0x5a   :  { %204 = vmatprep.subr.bf16.mxu0 %v304_v11 }
  0x5d   :  { %205 = vmatpush1.bf16.msra.mxu0 %v306_v12 }
  0x5e   :  { %206 = vmatprep.subr.bf16.mxu0 %v307_v13 }
  0x61   :  { %207 = vmatpush1.bf16.msra.mxu0 %v309_v14 }
  0x62   :  { %208 = vmatprep.subr.bf16.mxu0 %v310_v15 }
  0x65   :  { %209 = vmatpush1.bf16.msra.mxu0 %v312_v17 }
  0x66   :  { %210 = vmatprep.subr.bf16.mxu0 %v313_v18 }
  0x69   :  { %211 = vmatpush1.bf16.msra.mxu0 %v315_v19 }
  0xdb   :  { %v73_v20 = vpop.xlane.xlu0 %72 }
  0xdc   :  { %v75_v21 = vmul.f32 0.0078125, %v73_v20 }
  0xde   :  { %v76_v22 = vadd.f32 1e-06, %v75_v21 }
  0xe0   :  { %316 = vrsqrt.f32 %v76_v22 }
  0xea   :  { %v317_v23 = vpop.eup %316 }
  0xeb   :  { %v78_v25 = vmul.f32 %v317_v23, %v68_v0 }
  0xed   :  { %v86_v26 = vmul.f32 %v266_v24, %v78_v25 }
  0xef   :  { %v87_v27 = vpack.c.bf16 %v86_v26, %v86_v26 }
  0xf1   :  { %229 = vmatmul.mubr.bf16.vlgmr.msra.gmra.mrb[0].mxu0 %v87_v27 }
 0x1c4   :  { %v230_v35 = vpop.f32.mrb[0].mxu0 }
 0x1c5   :  { %v231_v36 = vadd.f32 %v230_v35, %v109_v33  ;;  %v232_v37 = vpop.f32.mrb[1].mxu0 }
 0x1c6   :  { %v233_v38 = vadd.f32 %v232_v37, %v113_v34  ;;  %v234_v39 = vpop.f32.mrb[2].mxu0 }
 0x1c7   :  { %v235_v40 = vpop.f32.mrb[3].mxu0 }
 0x1c8   :  { %v239_v41 = vcombine.low %v231_v36, %v233_v38 }
 0x1ca   :  { %283 = vst.sshfl [vmem:[#allocation10] sm:$0x33 pattern:$0x76325410] %v239_v41 }
 0x1cb   :  { %417 = shalt.err (!%p414_p8)
}
 0x1cc   :  { %s418_s14 = scalar_lea.hbm %s533_s4, 64 }
 0x1cd   :  { %p419_p9 = scmp.ne.s32.totalorder %s533_s4, %s418_s14  ;;  %p422_p10 = scmp.lt.u32.totalorder %s418_s14, %s533_s4 }
 0x1cf   :  { %p424_p11 = pnand %p422_p10, %p419_p9 }
 0x1d1   :  { %427 = shalt.err (!%p424_p11)
}
 0x1d2   :  { %258 = dma.vmem_to_hbm [thread:$0]  %s256_s11, 64, %s533_s4, [#allocation4]  }
 0x1d3   :  { %434 = dma.done.wait [#allocation4], 64  }
 0x1d4   :  { %435 = vsyncadd [#allocation4], 4294967232 }
 0x1d5   :  { %262 = vsyncpa [#allocation3], 1 }
 0x1d6   :  { %263 = vsyncpa [#allocation6], 1 }
 0x1d7   :  { %264 = vsyncpa [#allocation9], 1 }
 0x1d8   :  { %265 = vsyncpa [#allocation4], 1 }

// kernel: fwd.11
= control target key start
LH: loop header
LB: loop body
LE: loop exit
PB: predicated region body
PF: predicated region fallthrough
CT: control target
= control target key end

     0   :  { %7 = vsyncpa [#allocation3], 0  ;;  %s351_s0 = inlined_call_operand.hbm [shape: f32[2,128], index: 0, kind: input, shape index: {}]   ;;  %s352_s1 = inlined_call_operand.hbm [shape: bf16[128,128], index: 1, kind: input, shape index: {}]   ;;  %s353_s2 = inlined_call_operand.hbm [shape: f32[2,128], index: 2, kind: output, shape index: {}]  }
   0x1   :  { %8 = vsyncpa [#allocation6], 0 }
   0x2   :  { %9 = vsyncpa [#allocation4], 0  ;;  %s286_s9 = smov [#allocation2]   ;;  %s287_s11 = smov [#allocation5]  }
   0x3   :  { %s16_s10 = sshll.u32 %s286_s9, 4  ;;  %s25_s12 = sshll.u32 %s287_s11, 4  ;;  %s17_s10 = int_to_ptr.vmem [resolvable:$true] %s16_s10  ;;  %s308_s12 = int_to_ptr.vmem [resolvable:$true] %s25_s12 }
   0x4   :  { %s214_s15 = scalar_lea.hbm %s351_s0, 32 }
   0x5   :  { %p215_p0 = scmp.ne.s32.totalorder %s351_s0, %s214_s15  ;;  %p218_p1 = scmp.lt.u32.totalorder %s214_s15, %s351_s0 }
   0x7   :  { %p220_p2 = pnand %p218_p1, %p215_p0 }
   0x9   :  { %223 = shalt.err (!%p220_p2)
}
   0xa   :  { %s224_s20 = scalar_lea.vmem %s17_s10, 32  ;;  %p229_p4 = scmp.lt.s32.totalorder %s17_s10, %s17_s10 }
   0xb   :  { %p225_p3 = scmp.ne.s32.totalorder %s17_s10, %s224_s20  ;;  %p230_p5 = scmp.lt.s32.totalorder %s224_s20, %s224_s20 }
   0xd   :  { %p231_p6 = por %p230_p5, %p229_p4 }
   0xf   :  { %p232_p7 = pnand %p231_p6, %p225_p3 }
  0x11   :  { %235 = shalt.err (!%p232_p7)
}
  0x12   :  { %19 = dma.hbm_to_vmem [thread:$0]  %s351_s0, 32, %s17_s10, [#allocation3]  }
  0x13   :  { %s236_s25 = scalar_lea.hbm %s352_s1, 1024 }
  0x14   :  { %p237_p8 = scmp.ne.s32.totalorder %s352_s1, %s236_s25  ;;  %p240_p9 = scmp.lt.u32.totalorder %s236_s25, %s352_s1 }
  0x16   :  { %p242_p10 = pnand %p240_p9, %p237_p8 }
  0x18   :  { %245 = shalt.err (!%p242_p10)
}
  0x19   :  { %s246_s30 = scalar_lea.vmem %s308_s12, 1024  ;;  %p251_p12 = scmp.lt.s32.totalorder %s308_s12, %s308_s12 }
  0x1a   :  { %p247_p11 = scmp.ne.s32.totalorder %s308_s12, %s246_s30  ;;  %p252_p13 = scmp.lt.s32.totalorder %s246_s30, %s246_s30 }
  0x1c   :  { %p253_p0 = por %p252_p13, %p251_p12 }
  0x1e   :  { %p254_p1 = pnand %p253_p0, %p247_p11 }
  0x20   :  { %257 = shalt.err (!%p254_p1)
}
  0x21   :  { %s288_s0 = smov 64   ;;  %s289_s3 = smov 4  }
  0x22   :  { %31 = dma.hbm_to_vmem [thread:$0]  %s352_s1, 1024, %s308_s12, [#allocation6], %s288_s0, %s288_s0, %s289_s3  }
  0x23   :  { %280 = dma.done.wait [#allocation3], 32  }
  0x24   :  { %281 = vsyncadd [#allocation3], 4294967264 }
  0x25   :  { %282 = dma.done.wait [#allocation6], 1024  }
  0x26   :  { %283 = vsyncadd [#allocation6], 4294966272  ;;  %v290_v0 = vmov 0.0   ;;  %vm291_vm0 = vmmov 0   ;;  %v206_v1 = vld [vmem:[#allocation5] sm:$0xff]   ;;  %v207_v2 = vld [vmem:[#allocation5 + $0x8] sm:$0xff]  }
  0x27   :  { %179 = vmatprep.subr.bf16.mxu0 %v290_v0  ;;  %195 = vmatprep.mubr.msk.bf16.mxu0 %vm291_vm0, %v290_v0  ;;  %v208_v3 = vld [vmem:[#allocation5 + $0x10] sm:$0xff]   ;;  %v209_v4 = vld [vmem:[#allocation5 + $0x18] sm:$0xff]   ;;  %v210_v5 = vld [vmem:[#allocation5 + $0x20] sm:$0xff]   ;;  %s292_s1 = smov [#allocation7]  }
  0x28   :  { %180 = vmatpush3.bf16.msra.mxu0 %v206_v1  ;;  %v211_v6 = vld [vmem:[#allocation5 + $0x28] sm:$0xff]   ;;  %v212_v7 = vld [vmem:[#allocation5 + $0x30] sm:$0xff]   ;;  %v213_v8 = vld [vmem:[#allocation5 + $0x38] sm:$0xff]   ;;  %s152_s6 = sshll.u32 %s292_s1, 4  ;;  %s153_s6 = int_to_ptr.vmem [resolvable:$true] %s152_s6 }
  0x29   :  { %181 = vmatprep.subr.bf16.mxu0 %v290_v0  ;;  %v39_v9 = vld [vmem:[#allocation2] sm:$0x3]  ;;  %s258_s7 = scalar_lea.vmem %s153_s6, 32  ;;  %p263_p3 = scmp.lt.s32.totalorder %s153_s6, %s153_s6 }
  0x2a   :  { %v40_v10 = vpack.c.bf16 %v39_v9, %v39_v9  ;;  %p259_p2 = scmp.ne.s32.totalorder %s153_s6, %s258_s7  ;;  %p264_p4 = scmp.lt.s32.totalorder %s258_s7, %s258_s7 }
  0x2c   :  { %182 = vmatpush3.bf16.msra.mxu0 %v207_v2  ;;  %p265_p5 = por %p264_p4, %p263_p3 }
  0x2d   :  { %183 = vmatprep.subr.bf16.mxu0 %v290_v0 }
  0x2e   :  { %p266_p6 = pnand %p265_p5, %p259_p2 }
  0x30   :  { %184 = vmatpush3.bf16.msra.mxu0 %v208_v3 }
  0x31   :  { %185 = vmatprep.subr.bf16.mxu0 %v290_v0 }
  0x34   :  { %186 = vmatpush3.bf16.msra.mxu0 %v209_v4 }
  0x35   :  { %187 = vmatprep.subr.bf16.mxu0 %v290_v0 }
  0x38   :  { %188 = vmatpush3.bf16.msra.mxu0 %v210_v5 }
  0x39   :  { %189 = vmatprep.subr.bf16.mxu0 %v290_v0 }
  0x3c   :  { %190 = vmatpush3.bf16.msra.mxu0 %v211_v6 }
  0x3d   :  { %191 = vmatprep.subr.bf16.mxu0 %v290_v0 }
  0x40   :  { %192 = vmatpush3.bf16.msra.mxu0 %v212_v7 }
  0x41   :  { %193 = vmatprep.subr.bf16.mxu0 %v290_v0 }
  0x44   :  { %194 = vmatpush3.bf16.msra.mxu0 %v213_v8 }
  0x47   :  { %196 = vmatmul.mubr.bf16.vlgmr.msra.gmra.mrb[0].mxu0 %v40_v10 }
 0x11a   :  { %v139_v11 = vpop.f32.mrb[0].mxu0 }
 0x11b   :  { %145 = vst [vmem:[#allocation7] sm:$0x3] %v139_v11  ;;  %v197_v12 = vpop.f32.mrb[1].mxu0 }
 0x11c   :  { %v142_v13 = vpop.f32.mrb[2].mxu0 }
 0x11d   :  { %269 = shalt.err (!%p266_p6)
}
 0x11e   :  { %s270_s10 = scalar_lea.hbm %s353_s2, 32 }
 0x11f   :  { %p271_p7 = scmp.ne.s32.totalorder %s353_s2, %s270_s10  ;;  %p274_p8 = scmp.lt.u32.totalorder %s270_s10, %s353_s2 }
 0x121   :  { %p276_p9 = pnand %p274_p8, %p271_p7 }
 0x123   :  { %279 = shalt.err (!%p276_p9)
}
 0x124   :  { %155 = dma.vmem_to_hbm [thread:$0]  %s153_s6, 32, %s353_s2, [#allocation4]   ;;  %v198_v14 = vpop.f32.mrb[3].mxu0 }
 0x125   :  { %284 = dma.done.wait [#allocation4], 32  }
 0x126   :  { %285 = vsyncadd [#allocation4], 4294967264 }
 0x127   :  { %159 = vsyncpa [#allocation3], 1 }
 0x128   :  { %160 = vsyncpa [#allocation6], 1 }
 0x129   :  { %161 = vsyncpa [#allocation4], 1 }

// kernel: fwd.10
= control target key start
LH: loop header
LB: loop body
LE: loop exit
PB: predicated region body
PF: predicated region fallthrough
CT: control target
= control target key end

     0   :  { %s1272_s0 = inlined_call_operand.<no memory space> [shape: s32[1], index: 0, kind: input, shape index: {}]   ;;  %s1273_s1 = inlined_call_operand.hbm [shape: f32[2,2,2,32], index: 1, kind: input, shape index: {}]   ;;  %s1274_s2 = inlined_call_operand.hbm [shape: bf16[2,2,32,32], index: 2, kind: input, shape index: {}]   ;;  %s1275_s3 = inlined_call_operand.hbm [shape: bf16[2,2,32,32], index: 3, kind: input, shape index: {}]   ;;  %s1276_s4 = inlined_call_operand.hbm [shape: f32[2,2,2,32], index: 4, kind: output, shape index: {}]  }
   0x1   :  { %1291 = sst [smem:[#allocation22_spill]] %s1274_s2 }
   0x2   :  { %9 = sst [smem:[#allocation3]] %s1272_s0 }
   0x3   :  { %10 = vsyncpa [#allocation5], 0 }
   0x4   :  { %12 = vsyncpa [#allocation5 + $0x1], 0 }
   0x5   :  { %13 = vsyncpa [#allocation8], 0 }
   0x6   :  { %15 = vsyncpa [#allocation8 + $0x1], 0 }
   0x7   :  { %16 = vsyncpa [#allocation6], 0 }
   0x8   :  { %18 = vsyncpa [#allocation6 + $0x1], 0  ;;  %s971_s17 = smov 0   ;;  %s973_s18 = smov 0  }
   0x9   :  { %s975_s19 = smov 0   ;;  %s977_s20 = smov 0  }
   0xa   :  { %s979_s21 = smov 0   ;;  %s981_s22 = smov 0  }
   0xb   :  { %s983_s23 = smov 0   ;;  %s985_s0 = smov 0  }
   0xc LB: > { %1292 = sst [smem:[#allocation14_spill]] %s905_s17  ;;  %s1012_s24 = sadd.s32 4294967295, %s933_s0   ;;  %s933_s0 = sphi %s985_s0, %s24_s0   ;;  %s929_s23 = sphi %s983_s23, %s1323_s23   ;;  %s925_s22 = sphi %s981_s22, %s1327_s22   ;;  %s921_s21 = sphi %s979_s21, %s1321_s21   ;;  %s917_s20 = sphi %s977_s20, %s1326_s20   ;;  %s913_s19 = sphi %s975_s19, %s1320_s19   ;;  %s909_s18 = sphi %s973_s18, %s1325_s18   ;;  %s905_s17 = sphi %s971_s17, %s1324_s17  }
   0xd   : > { %1293 = sst [smem:[#allocation15_spill]] %s913_s19  ;;  %s589_s25 = sadd.s32 4294967294, %s933_s0  }
   0xe   : > { %1294 = sst [smem:[#allocation16_spill]] %s929_s23  ;;  %s33_s26 = sadd.s32 1, %s925_s22 }
   0xf   : > { %1295 = sst [smem:[#allocation17_spill]] %s933_s0  ;;  %s36_s27 = sadd.s32 1, %s929_s23 }
  0x10   : > { %p34_p0 = scmp.ge.s32.totalorder %s33_s26, 2  ;;  %s45_s28 = sadd.s32 1, %s913_s19 }
  0x11   : > { %p52_p1 = scmp.ne.s32.totalorder %s913_s19, %s909_s18  ;;  %p53_p2 = scmp.eq.s32.totalorder %s933_s0, 0 }
  0x12   : > { %s1329_s26 = smov (%p34_p0, %s33_s26), 0  ;;  %s1331_s27 = smov (!%p34_p0, %s36_s27), %s929_s23 }
  0x13   : > { %1296 = sst [smem:[#allocation18_spill]] %s1329_s26  ;;  %s41_s29 = ssub.s32 %s925_s22, %s1329_s26 }
  0x14   : > { %p1026_p3 = por %p53_p2, %p52_p1  ;;  %p38_p4 = scmp.ge.s32.totalorder %s1331_s27, 2 }
  0x15   : > { %p58_p5 = scmp.ne.s32.totalorder %s909_s18, %s905_s17  ;;  %p59_p6 = scmp.eq.s32.totalorder %s1012_s24, 0 }
  0x16   : > { %p140_p7 = scmp.eq.s32.totalorder %s1012_s24, 3  ;;  %s1333_s27 = smov (%p38_p4, %s1331_s27), 0 }
  0x17   : > { %1298 = sst [smem:[#allocation19_spill]] %s1333_s27  ;;  %p1036_p8 = por %p59_p6, %p58_p5 }
  0x18   : > { %p1040_p9 = por %p140_p7, %p52_p1  ;;  %s40_s7 = ssub.s32 %s929_s23, %s1333_s27 }
  0x19   : > { %s1299_s5 = scalar_select %p1036_p8, 1, 0 }
  0x1a   : > { %s1300_s6 = scalar_select %p1040_p9, 1, 0 }
  0x1b   : > { %p146_p10 = scmp.eq.s32.totalorder %s589_s25, 3  ;;  %s42_s8 = sor.u32 %s41_s29, %s40_s7 }
  0x1c   : > { %p43_p11 = scmp.eq.s32.totalorder %s42_s8, 0  ;;  %p663_p13 = scmp.lt.s32.totalorder %s933_s0, 4 }
  0x1d   : > { %p1046_p12 = por %p146_p10, %p58_p5  ;;  %s1052_s10 = sand.u32 1, %s913_s19  }
  0x1e   : > { %s1055_s11 = scalar_select %p43_p11, %s913_s19, %s45_s28  }
  0x1f   : > { %s1301_s9 = scalar_select %p1046_p12, 1, 0 }
  0x20   : > { %1303 = sst [smem:[#allocation21_spill]] %s1055_s11  ;;  %p1059_p0 = pnand %p663_p13, %p1026_p3 }
  0x21   : > { %1302 = sst [smem:[#allocation20_spill]] %s1301_s9  ;;  %s186_s13 = sand.u32 1, %s933_s0  }
  0x22   : > { %s1278_s14 = sshll.u32 %s1052_s10, 4  ;;  %s596_s15 = sshll.u32 %s925_s22, 2 }
  0x23   : > { %s597_s16 = sshll.u32 %s929_s23, 3  ;;  %s190_s29 = scalar_lea.vmem [#allocation7], %s1278_s14 }
  0x24   : > { %s1067_s25 = sadd.s32 %s597_s16, %s596_s15  ;;  %s199_s7 = sshll.u32 %s190_s29, 4  ;;  %s1072_s7 = int_to_ptr.vmem [resolvable:$true] %s199_s7 }
  0x25   : > { %s1279_s8 = sshll.u32 %s1067_s25, 6  ;;  %s1305_s2 = sld [smem:[#allocation22_spill]] }
  0x26   : > { %s1081_s15 = scalar_lea.sflag [#allocation8], %s186_s13  ;;  %p1087_p2 = pneg %p1059_p0 }
  0x2b   : > { %s1079_s27 = scalar_lea.hbm %s1305_s2, %s1279_s8  ;;  %s746_s14 = scalar_lea.hbm %s1305_s2, 1024 }
  0x2c   : > { %s741_s16 = scalar_lea.hbm %s1079_s27, 256  ;;  %p747_p5 = scmp.lt.u32.totalorder %s1079_s27, %s1305_s2 }
  0x2d   : > { %p742_p1 = scmp.ne.s32.totalorder %s1079_s27, %s741_s16  ;;  %p748_p6 = scmp.lt.u32.totalorder %s746_s14, %s741_s16 }
  0x2e   : > { %p750_p10 = scmp.lt.u32.totalorder %s741_s16, %s1079_s27 }
  0x2f   : > { %p744_p3 = pnand %p1087_p2, %p742_p1  ;;  %p749_p7 = por %p748_p6, %p747_p5 }
  0x31   : > { %p745_p4 = pneg %p744_p3  ;;  %p751_p11 = por %p750_p10, %p749_p7 }
  0x33   : > { %p752_p13 = pnand %p751_p11, %p745_p4 }
  0x35   : > { %755 = shalt.err (!%p752_p13)
}
  0x36   : > { %s756_s13 = scalar_lea.vmem %s1072_s7, 256  ;;  %s935_s28 = smov [#allocation7]  }
  0x37   : > { %p757_p1 = scmp.ne.s32.totalorder %s1072_s7, %s756_s13  ;;  %s761_s30 = sshll.u32 %s935_s28, 4  ;;  %s762_s30 = int_to_ptr.vmem [resolvable:$false] %s761_s30 }
  0x38   : > { %s763_s26 = scalar_lea.vmem %s762_s30, 512  ;;  %p764_p9 = scmp.lt.s32.totalorder %s1072_s7, %s762_s30 }
  0x39   : > { %p759_p3 = pnand %p757_p1, %p1087_p2  ;;  %p765_p8 = scmp.lt.s32.totalorder %s763_s26, %s756_s13 }
  0x3b   : > { %p760_p12 = pneg %p759_p3  ;;  %p766_p5 = por %p765_p8, %p764_p9 }
  0x3d   : > { %p767_p6 = pnand %p766_p5, %p760_p12 }
  0x3f   : > { %770 = shalt.err (!%p767_p6)
}
  0x40   : > { %s1284_s14 = smov 64   ;;  %s1285_s8 = smov 4  }
  0x41   : > { %655 = dma.hbm_to_vmem [thread:$0]  (!%p1059_p0), %s1079_s27, 256, %s1072_s7, %s1081_s15, %s1284_s14, %s1284_s14, %s1285_s8  }
  0x42   : > { %s1307_s16 = sshll.u32 %s1067_s25, 6  ;;  %s1308_s26 = sshll.u32 %s1052_s10, 4 }
  0x43   : > { %s1119_s30 = scalar_lea.hbm %s1275_s3, %s1307_s16  ;;  %s213_s2 = scalar_lea.vmem [#allocation9], %s1308_s26 }
  0x44   : > { %s222_s11 = sshll.u32 %s213_s2, 4  ;;  %p603_p8 = scmp.ge.s32.totalorder %s933_s0, 1  ;;  %s1123_s11 = int_to_ptr.vmem [resolvable:$true] %s222_s11 }
  0x45   : > { %p230_p9 = scmp.lt.s32.totalorder %s933_s0, 5  ;;  %s592_s27 = sshll.u32 %s1052_s10, 1 }
  0x46   : > { %s593_s25 = sshll.u32 %s929_s23, 1  ;;  %s170_s14 = scalar_lea.vmem [#allocation4], %s592_s27 }
  0x47   : > { %p1127_p12 = pnand %p603_p8, %p230_p9  ;;  %s175_s7 = sadd.s32 %s925_s22, %s593_s25 }
  0x48   : > { %s179_s13 = sshll.u32 %s170_s14, 4  ;;  %s594_s28 = sshll.u32 %s175_s7, 5  ;;  %s1134_s13 = int_to_ptr.vmem [resolvable:$true] %s179_s13 }
  0x49   : > { %s1309_s19 = scalar_select %p1127_p12, 1, 0 }
  0x4a   : > { %s177_s2 = scalar_lea.hbm %s1273_s1, %s594_s28  ;;  %s167_s8 = scalar_lea.sflag [#allocation5], %s1052_s10 }
  0x4b   : > { %s771_s9 = scalar_lea.hbm %s177_s2, 32  ;;  %s776_s23 = scalar_lea.hbm %s1273_s1, 128 }
  0x4c   : > { %p772_p4 = scmp.ne.s32.totalorder %s177_s2, %s771_s9  ;;  %p777_p11 = scmp.lt.u32.totalorder %s177_s2, %s1273_s1 }
  0x4d   : > { %p778_p13 = scmp.lt.u32.totalorder %s776_s23, %s771_s9  ;;  %p780_p3 = scmp.lt.u32.totalorder %s771_s9, %s177_s2 }
  0x4e   : > { %p774_p7 = pnand %p772_p4, %p1087_p2 }
  0x4f   : > { %p779_p1 = por %p778_p13, %p777_p11 }
  0x50   : > { %p775_p10 = pneg %p774_p7 }
  0x51   : > { %p781_p5 = por %p780_p3, %p779_p1 }
  0x53   : > { %p782_p6 = pnand %p781_p5, %p775_p10 }
  0x55   : > { %785 = shalt.err (!%p782_p6)
}
  0x56   : > { %s786_s10 = scalar_lea.vmem %s1134_s13, 32  ;;  %s938_s17 = smov [#allocation4]  }
  0x57   : > { %p787_p8 = scmp.ne.s32.totalorder %s1134_s13, %s786_s10  ;;  %s791_s0 = sshll.u32 %s938_s17, 4  ;;  %s792_s0 = int_to_ptr.vmem [resolvable:$false] %s791_s0 }
  0x58   : > { %s793_s14 = scalar_lea.vmem %s792_s0, 64  ;;  %p794_p7 = scmp.lt.s32.totalorder %s1134_s13, %s792_s0 }
  0x59   : > { %p789_p9 = pnand %p787_p8, %p1087_p2  ;;  %p795_p12 = scmp.lt.s32.totalorder %s793_s14, %s786_s10 }
  0x5b   : > { %p790_p4 = pneg %p789_p9  ;;  %p796_p11 = por %p795_p12, %p794_p7 }
  0x5d   : > { %p797_p13 = pnand %p796_p11, %p790_p4 }
  0x5f   : > { %800 = shalt.err (!%p797_p13)
}
  0x60   : > { %652 = dma.hbm_to_vmem [thread:$0]  (!%p1059_p0), %s177_s2, 32, %s1134_s13, %s167_s8  }
  0x61   : > { %s801_s23 = scalar_lea.hbm %s1119_s30, 256  ;;  %s806_s28 = scalar_lea.hbm %s1275_s3, 1024 }
  0x62   : > { %p802_p10 = scmp.ne.s32.totalorder %s1119_s30, %s801_s23  ;;  %p807_p12 = scmp.lt.u32.totalorder %s1119_s30, %s1275_s3 }
  0x63   : > { %p808_p5 = scmp.lt.u32.totalorder %s806_s28, %s801_s23  ;;  %p810_p8 = scmp.lt.u32.totalorder %s801_s23, %s1119_s30 }
  0x64   : > { %p804_p1 = pnand %p802_p10, %p1087_p2 }
  0x65   : > { %p809_p6 = por %p808_p5, %p807_p12 }
  0x66   : > { %p805_p3 = pneg %p804_p1 }
  0x67   : > { %p811_p9 = por %p810_p8, %p809_p6 }
  0x69   : > { %p812_p4 = pnand %p811_p9, %p805_p3 }
  0x6b   : > { %815 = shalt.err (!%p812_p4)
}
  0x6c   : > { %s816_s8 = scalar_lea.vmem %s1123_s11, 256  ;;  %s939_s13 = smov [#allocation9]  }
  0x6d   : > { %p817_p7 = scmp.ne.s32.totalorder %s1123_s11, %s816_s8  ;;  %s821_s2 = sshll.u32 %s939_s13, 4  ;;  %s822_s2 = int_to_ptr.vmem [resolvable:$false] %s821_s2 }
  0x6e   : > { %s823_s25 = scalar_lea.vmem %s822_s2, 512  ;;  %p824_p10 = scmp.lt.s32.totalorder %s1123_s11, %s822_s2 }
  0x6f   : > { %p819_p11 = pnand %p817_p7, %p1087_p2  ;;  %p825_p1 = scmp.lt.s32.totalorder %s823_s25, %s816_s8 }
  0x71   : > { %p820_p13 = pneg %p819_p11  ;;  %p826_p12 = por %p825_p1, %p824_p10 }
  0x73   : > { %p827_p5 = pnand %p826_p12, %p820_p13 }
  0x75   : > { %830 = shalt.err (!%p827_p5)
}
  0x76   : > { %s1310_s27 = smov 4   ;;  %s1311_s10 = smov 64  }
  0x77   : > { %658 = dma.hbm_to_vmem [thread:$0]  (!%p1059_p0), %s1119_s30, 256, %s1123_s11, %s1081_s15, %s1311_s10, %s1311_s10, %s1310_s27  }
  0x78   : > { %p1312_p2 = scmp.ne.s32.totalorder %s1309_s19, 0 }
  0x79   : > { %s1184_s29 = sand.u32 (!%p1312_p2), 1, %s909_s18   ;;  %p1313_p3 = scmp.ne.s32.totalorder (!%p1312_p2), %s1299_s5, 0 }
  0x7a   : > { %234 = sbr.rel (%p1312_p2) target bundleno = 754 (0x2f2), region = 32  ;;  %s604_s17 = sshll.u32 (!%p1312_p2), %s1184_s29, 1 }
  0x7b   : > { %s237_s0 = scalar_lea.sflag (!%p1312_p2), [#allocation5], %s1184_s29  ;;  %s240_s12 = scalar_lea.vmem (!%p1312_p2), [#allocation4], %s604_s17 }
  0x81   : > { %892 = dma.done.wait (%p1313_p3), %s237_s0, 32  }
  0x82   : > { %894 = vsyncadd (%p1313_p3), %s237_s0, 4294967264  ;;  %s245_s19 = sand.u32 1, %s1012_s24   ;;  %s605_s11 = sshll.u32 %s1184_s29, 4 }
  0x83   : > { %s246_s15 = scalar_lea.sflag [#allocation8], %s245_s19  ;;  %s249_s30 = scalar_lea.vmem [#allocation7], %s605_s11 }
  0x84   : > { %896 = dma.done.wait (%p1313_p3), %s246_s15, 512  }
  0x85   : > { %898 = vsyncadd (%p1313_p3), %s246_s15, 4294966784  ;;  %v940_v0 = vmov 0.0   ;;  %vm941_vm0 = vmmov 0   ;;  %vm312_vm1 = vcmask 261120   ;;  %v733_v1 = vld [vmem:[%s249_s30] sm:$0xff]   ;;  %v734_v3 = vld [vmem:[%s249_s30 + $0x8] sm:$0xff]   ;;  %v364_v7 = vlaneseq }
  0x86   : > { %625 = vmatprep.subr.bf16.mxu0 %v940_v0  ;;  %629 = vmatprep.mubr.msk.bf16.mxu0 %vm941_vm0, %v940_v0  ;;  %v317_v2 = vsel %vm312_vm1, %v733_v1, 0  ;;  %v320_v4 = vsel %vm312_vm1, %v734_v3, 0  ;;  %v292_v5 = vld [vmem:[%s240_s12] sm:$0x3]  ;;  %s363_s24 = sld [smem:[#allocation3]]  ;;  %vm369_vm3 = vcmask 254976  }
  0x87   : > { %633 = vmatprep.subr.bf16.mxu1 %v940_v0  ;;  %637 = vmatprep.mubr.msk.bf16.mxu1 %vm941_vm0, %v940_v0  ;;  %v293_v6 = vpack.c.bf16 %v292_v5, %v292_v5  ;;  %v365_v8 = vand.u32 127, %v364_v7  ;;  %s258_s5 = scalar_lea.vmem [#allocation9], %s605_s11  ;;  %s615_s14 = sshll.u32 %s921_s21, 1 }
  0x88   : > { %626 = vmatpush3.bf16.xpose.msra.mxu0 %v317_v2  ;;  %v735_v17 = vld [vmem:[%s258_s5] sm:$0xff]   ;;  %v736_v18 = vld [vmem:[%s258_s5 + $0x8] sm:$0xff]   ;;  %s450_s23 = sadd.s32 %s917_s20, %s615_s14  ;;  %s290_s7 = scalar_lea.vmem [#allocation10], %s604_s17 }
  0x89   : > { %627 = vmatprep.subr.bf16.mxu0 %v940_v0  ;;  %634 = vmatpush3.bf16.msra.mxu1 %v735_v17  ;;  %s616_s9 = sshll.u32 %s450_s23, 5  ;;  %s454_s28 = sshll.u32 %s290_s7, 4  ;;  %s1219_s28 = int_to_ptr.vmem [resolvable:$true] %s454_s28 }
  0x8a   : > { %635 = vmatprep.subr.bf16.mxu1 %v940_v0  ;;  %s1217_s8 = scalar_lea.hbm %s1276_s4, %s616_s9  ;;  %s439_s20 = scalar_lea.sflag [#allocation6], %s1184_s29 }
  0x8b   : > { %s831_s21 = scalar_lea.vmem %s1219_s28, 32  ;;  %p1314_p6 = scmp.ne.s32.totalorder %s1300_s6, 0 }
  0x8c   : > { %v366_v9 = vstv %s363_s24  ;;  %p832_p0 = scmp.ne.s32.totalorder %s1219_s28, %s831_s21  ;;  %s942_s13 = smov [#allocation10]  }
  0x8d   : > { %vm367_vm2 = vcmp.lt.s32.totalorder %v365_v8, %v366_v9  ;;  %636 = vmatpush3.bf16.msra.mxu1 %v736_v18  ;;  %s835_s2 = sshll.u32 %s942_s13, 4  ;;  %s836_s2 = int_to_ptr.vmem [resolvable:$false] %s835_s2 }
  0x8e   : > { %p833_p8 = pnand %p832_p0, %p1314_p6  ;;  %s837_s25 = scalar_lea.vmem %s836_s2, 64 }
  0x8f   : > { %p838_p4 = scmp.lt.s32.totalorder %s1219_s28, %s836_s2  ;;  %p839_p7 = scmp.lt.s32.totalorder %s837_s25, %s831_s21 }
  0x90   : > { %628 = vmatpush3.bf16.xpose.msra.mxu0 %v320_v4  ;;  %p834_p9 = pneg %p833_p8 }
  0x91   : > { %p840_p11 = por %p839_p7, %p838_p4 }
  0x93   : > { %p841_p13 = pnand %p840_p11, %p834_p9 }
  0x97   : > { %630 = vmatmul.mubr.msk.bf16.vlgmr.msra.gmra.mrb[0].mxu0 %vm312_vm1, %v293_v6 }
 0x16a   : > { %v356_v10 = vpop.f32.mrb[0].mxu0 }
 0x16b   : > { %v362_v11 = vmul.f32 0.17677669, %v356_v10  ;;  %v631_v12 = vpop.f32.mrb[1].mxu0 }
 0x16c   : > { %v359_v13 = vpop.f32.mrb[2].mxu0 }
 0x16d   : > { %v632_v14 = vpop.f32.mrb[3].mxu0  ;;  %v368_v15 = vsel %vm367_vm2, %v362_v11, -inf }
 0x16e   : > { %v370_v16 = vsel %vm369_vm3, %v368_v15, -inf }
 0x16f   : > { %371 = vmax.xlane.f32.xlu0 %v370_v16 }
 0x1fc   : > { %v372_v19 = vpop.xlane.xlu0 %371 }
 0x1fd   : > { %v373_v20 = vsub.f32 %v368_v15, %v372_v19 }
 0x1ff   : > { %v374_v21 = vmul.f32 1.442695, %v373_v20 }
 0x201   : > { %737 = vpow2.f32 %v374_v21 }
 0x20b   : > { %v738_v22 = vpop.eup %737 }
 0x20c   : > { %v376_v23 = vsel %vm369_vm3, %v738_v22, 0.0  ;;  %v379_v24 = vpack.c.bf16 %v738_v22, %v738_v22 }
 0x20d   : > { %377 = vadd.xlane.f32.xlu0 %v376_v23 }
 0x20e   : > { %638 = vmatmul.mubr.msk.bf16.vlgmr.msra.gmra.mrb[0].mxu1 %vm312_vm1, %v379_v24 }
 0x29a   : > { %v378_v25 = vpop.xlane.xlu0 %377 }
 0x29b   : > { %739 = vrcp.f32 %v378_v25 }
 0x2a5   : > { %v740_v26 = vpop.eup %739 }
 0x2e1   : > { %v429_v27 = vpop.f32.mrb[0].mxu1 }
 0x2e2   : > { %v436_v28 = vmul.f32 %v740_v26, %v429_v27  ;;  %v639_v29 = vpop.f32.mrb[1].mxu1 }
 0x2e3   : > { %v432_v30 = vpop.f32.mrb[2].mxu1 }
 0x2e4   : > { %v640_v31 = vpop.f32.mrb[3].mxu1  ;;  %437 = vst.msk [vmem:[%s290_s7] sm:$0x3] %vm369_vm3, %v436_v28 }
 0x2e5   : > { %844 = shalt.err (!%p841_p13)
}
 0x2e6   : > { %s845_s27 = scalar_lea.hbm %s1217_s8, 32  ;;  %s849_s17 = scalar_lea.hbm %s1276_s4, 128 }
 0x2e7   : > { %p846_p10 = scmp.ne.s32.totalorder %s1217_s8, %s845_s27  ;;  %p850_p5 = scmp.lt.u32.totalorder %s1217_s8, %s1276_s4 }
 0x2e8   : > { %p851_p2 = scmp.lt.u32.totalorder %s849_s17, %s845_s27  ;;  %p853_p0 = scmp.lt.u32.totalorder %s845_s27, %s1217_s8 }
 0x2e9   : > { %p847_p1 = pnand %p846_p10, %p1314_p6 }
 0x2ea   : > { %p852_p3 = por %p851_p2, %p850_p5 }
 0x2eb   : > { %p848_p12 = pneg %p847_p1 }
 0x2ec   : > { %p854_p8 = por %p853_p0, %p852_p3 }
 0x2ee   : > { %p855_p9 = pnand %p854_p8, %p848_p12 }
 0x2f0   : > { %858 = shalt.err (!%p855_p9)
}
 0x2f1   : > { %647 = dma.vmem_to_hbm [thread:$0]  (%p1314_p6), %s1219_s28, 32, %s1217_s8, %s439_s20  }
 0x2f2 PF: > { %s1315_s19 = sld [smem:[#allocation17_spill]]  ;;  %s1316_s11 = sld [smem:[#allocation14_spill]] }
 0x2f3   : > { %s1317_s15 = sld [smem:[#allocation20_spill]] }
 0x2f8   : > { %p664_p4 = scmp.ge.s32.totalorder %s1315_s19, 2  ;;  %s466_s30 = sand.u32 1, %s1316_s11  }
 0x2f9   : > { %p1318_p7 = scmp.ne.s32.totalorder %s1317_s15, 0  ;;  %s467_s24 = scalar_lea.sflag [#allocation6], %s466_s30 }
 0x2fb   : > { %p660_p11 = pnand %p664_p4, %p1318_p7 }
 0x2fd   : > { %900 = dma.done.wait (!%p660_p11), %s467_s24, 32  }
 0x2fe   : > { %902 = vsyncadd (!%p660_p11), %s467_s24, 4294967264  ;;  %s24_s0 = sadd.s32 1, %s1315_s19   ;;  %s1319_s5 = sld [smem:[#allocation15_spill]] }
 0x2ff   : > { %p21_p13 = scmp.ge.s32.totalorder %s24_s0, 6   ;;  %s1320_s19 = sld [smem:[#allocation21_spill]] }
 0x300   : > { %s1321_s21 = sld [smem:[#allocation16_spill]]  ;;  %s1322_s6 = sld [smem:[#allocation18_spill]] }
 0x301   : > { %s1323_s23 = sld [smem:[#allocation19_spill]]  ;;  %s1324_s17 = smov %s909_s18 }
 0x302   : > { %s1326_s20 = smov %s925_s22  ;;  %23 = sbr.rel (!%p21_p13) target bundleno = 12 (0xc), region = 101 }
 0x304   : > { %s1325_s18 = smov %s1319_s5 }
 0x306   : > { %s1327_s22 = smov %s1322_s6 }
 0x309   :  { %472 = vsyncpa [#allocation5], 1 }
 0x30a   :  { %474 = vsyncpa [#allocation5 + $0x1], 1 }
 0x30b   :  { %475 = vsyncpa [#allocation8], 1 }
 0x30c   :  { %477 = vsyncpa [#allocation8 + $0x1], 1 }
 0x30d   :  { %478 = vsyncpa [#allocation6], 1 }
 0x30e   :  { %480 = vsyncpa [#allocation6 + $0x1], 1 }

// kernel: fwd.17
= control target key start
LH: loop header
LB: loop body
LE: loop exit
PB: predicated region body
PF: predicated region fallthrough
CT: control target
= control target key end

     0   :  { %vm14_vm0 = vcmask 1041408   ;;  %s108_s0 = inlined_call_operand.vmem [shape: f32[2,128], index: 0, kind: input, shape index: {}]   ;;  %s109_s1 = inlined_call_operand.vmem [shape: f32[1,128], index: 1, kind: input, shape index: {}]   ;;  %s110_s2 = inlined_call_operand.hbm [shape: f32[2,128], index: 2, kind: output, shape index: {}]  }
   0x1   :  { %v12_v0 = vld [vmem:[%s108_s0] sm:$0x3] }
   0x2   :  { %7 = vsyncpa [#allocation3], 0  ;;  %v13_v1 = vmul.f32 %v12_v0, %v12_v0  ;;  %v46_v7 = vld [vmem:[%s109_s1] ss:$0 sm:$0xff]  ;;  %s74_s13 = smov [#allocation2]  }
   0x3   :  { %s38_s14 = sshll.u32 %s74_s13, 4  ;;  %s39_s14 = int_to_ptr.vmem [resolvable:$true] %s38_s14 }
   0x4   :  { %v15_v2 = vsel %vm14_vm0, %v13_v1, 0.0  ;;  %s50_s0 = scalar_lea.vmem %s39_s14, 32  ;;  %p55_p1 = scmp.lt.s32.totalorder %s39_s14, %s39_s14 }
   0x5   :  { %16 = vadd.xlane.f32.xlu0 %v15_v2  ;;  %p51_p0 = scmp.ne.s32.totalorder %s39_s14, %s50_s0  ;;  %p56_p2 = scmp.lt.s32.totalorder %s50_s0, %s50_s0 }
   0x7   :  { %p57_p3 = por %p56_p2, %p55_p1 }
   0x9   :  { %p58_p4 = pnand %p57_p3, %p51_p0 }
  0x92   :  { %v17_v3 = vpop.xlane.xlu0 %16 }
  0x93   :  { %v19_v4 = vmul.f32 0.0078125, %v17_v3 }
  0x95   :  { %v20_v5 = vadd.f32 1e-06, %v19_v4 }
  0x97   :  { %48 = vrsqrt.f32 %v20_v5 }
  0xa1   :  { %v49_v6 = vpop.eup %48 }
  0xa2   :  { %v22_v8 = vmul.f32 %v49_v6, %v12_v0 }
  0xa4   :  { %v30_v9 = vmul.f32 %v46_v7, %v22_v8 }
  0xa6   :  { %31 = vst [vmem:[#allocation2] sm:$0x3] %v30_v9 }
  0xa7   :  { %61 = shalt.err (!%p58_p4)
}
  0xa8   :  { %s62_s17 = scalar_lea.hbm %s110_s2, 32 }
  0xa9   :  { %p63_p5 = scmp.ne.s32.totalorder %s110_s2, %s62_s17  ;;  %p66_p6 = scmp.lt.u32.totalorder %s62_s17, %s110_s2 }
  0xab   :  { %p68_p7 = pnand %p66_p6, %p63_p5 }
  0xad   :  { %71 = shalt.err (!%p68_p7)
}
  0xae   :  { %41 = dma.vmem_to_hbm [thread:$0]  %s39_s14, 32, %s110_s2, [#allocation3]  }
  0xaf   :  { %72 = dma.done.wait [#allocation3], 32  }
  0xb0   :  { %73 = vsyncadd [#allocation3], 4294967264 }
  0xb1   :  { %45 = vsyncpa [#allocation3], 1 }

// kernel: fwd.12
= control target key start
LH: loop header
LB: loop body
LE: loop exit
PB: predicated region body
PF: predicated region fallthrough
CT: control target
= control target key end

     0   :  { %10 = vsyncpa [#allocation4], 0  ;;  %s1017_s0 = inlined_call_operand.hbm [shape: f32[2,128], index: 0, kind: input, shape index: {}]   ;;  %s1018_s1 = inlined_call_operand.hbm [shape: f32[1,128], index: 1, kind: input, shape index: {}]   ;;  %s1019_s2 = inlined_call_operand.hbm [shape: bf16[128,256], index: 2, kind: input, shape index: {}]   ;;  %s1020_s3 = inlined_call_operand.hbm [shape: bf16[128,256], index: 3, kind: input, shape index: {}]   ;;  %s1021_s4 = inlined_call_operand.hbm [shape: bf16[256,128], index: 4, kind: input, shape index: {}]   ;;  %s1022_s5 = inlined_call_operand.hbm [shape: f32[2,128], index: 5, kind: output, shape index: {}]  }
   0x1   :  { %11 = vsyncpa [#allocation7], 0 }
   0x2   :  { %12 = vsyncpa [#allocation10], 0 }
   0x3   :  { %13 = vsyncpa [#allocation5], 0  ;;  %s892_s18 = smov [#allocation6]   ;;  %s752_s22 = scalar_lea.hbm %s1018_s1, 16 }
   0x4   :  { %s30_s19 = sshll.u32 %s892_s18, 4  ;;  %p753_p0 = scmp.ne.s32.totalorder %s1018_s1, %s752_s22  ;;  %s31_s19 = int_to_ptr.vmem [resolvable:$true] %s30_s19 }
   0x5   :  { %p756_p1 = scmp.lt.u32.totalorder %s752_s22, %s1018_s1 }
   0x7   :  { %p758_p2 = pnand %p756_p1, %p753_p0 }
   0x9   :  { %761 = shalt.err (!%p758_p2)
}
   0xa   :  { %s762_s27 = scalar_lea.vmem %s31_s19, 16  ;;  %s766_s28 = scalar_lea.vmem %s31_s19, 32 }
   0xb   :  { %p763_p3 = scmp.ne.s32.totalorder %s31_s19, %s762_s27  ;;  %p767_p4 = scmp.lt.s32.totalorder %s31_s19, %s31_s19 }
   0xc   :  { %p768_p5 = scmp.lt.s32.totalorder %s766_s28, %s762_s27 }
   0xe   :  { %p769_p6 = por %p768_p5, %p767_p4 }
  0x10   :  { %p770_p7 = pnand %p769_p6, %p763_p3 }
  0x12   :  { %773 = shalt.err (!%p770_p7)
}
  0x13   :  { %33 = dma.hbm_to_vmem [thread:$0]  %s1018_s1, 16, %s31_s19, [#allocation7]  }
  0x14   :  { %s893_s6 = smov [#allocation9]   ;;  %s894_s8 = smov [#allocation3]  }
  0x15   :  { %s51_s7 = sshll.u32 %s893_s6, 4  ;;  %s20_s9 = sshll.u32 %s894_s8, 4  ;;  %s52_s7 = int_to_ptr.vmem [resolvable:$true] %s51_s7  ;;  %s21_s9 = int_to_ptr.vmem [resolvable:$true] %s20_s9 }
  0x16   :  { %s774_s12 = scalar_lea.hbm %s1020_s3, 2048 }
  0x17   :  { %p775_p8 = scmp.ne.s32.totalorder %s1020_s3, %s774_s12  ;;  %p778_p9 = scmp.lt.u32.totalorder %s774_s12, %s1020_s3 }
  0x19   :  { %p780_p10 = pnand %p778_p9, %p775_p8 }
  0x1b   :  { %783 = shalt.err (!%p780_p10)
}
  0x1c   :  { %s784_s1 = scalar_lea.vmem %s52_s7, 2048  ;;  %p789_p12 = scmp.lt.s32.totalorder %s52_s7, %s52_s7 }
  0x1d   :  { %p785_p11 = scmp.ne.s32.totalorder %s52_s7, %s784_s1  ;;  %p790_p13 = scmp.lt.s32.totalorder %s784_s1, %s784_s1 }
  0x1f   :  { %p791_p0 = por %p790_p13, %p789_p12 }
  0x21   :  { %p792_p1 = pnand %p791_p0, %p785_p11 }
  0x23   :  { %795 = shalt.err (!%p792_p1)
}
  0x24   :  { %s895_s17 = smov 128   ;;  %s896_s18 = smov 8  }
  0x25   :  { %57 = dma.hbm_to_vmem [thread:$0]  %s1020_s3, 2048, %s52_s7, [#allocation10], %s895_s17, %s895_s17, %s896_s18  }
  0x26   :  { %s796_s23 = scalar_lea.hbm %s1017_s0, 32 }
  0x27   :  { %p797_p2 = scmp.ne.s32.totalorder %s1017_s0, %s796_s23  ;;  %p800_p3 = scmp.lt.u32.totalorder %s796_s23, %s1017_s0 }
  0x29   :  { %p802_p4 = pnand %p800_p3, %p797_p2 }
  0x2b   :  { %805 = shalt.err (!%p802_p4)
}
  0x2c   :  { %s806_s28 = scalar_lea.vmem %s21_s9, 32  ;;  %p811_p6 = scmp.lt.s32.totalorder %s21_s9, %s21_s9 }
  0x2d   :  { %p807_p5 = scmp.ne.s32.totalorder %s21_s9, %s806_s28  ;;  %p812_p7 = scmp.lt.s32.totalorder %s806_s28, %s806_s28 }
  0x2f   :  { %p813_p8 = por %p812_p7, %p811_p6 }
  0x31   :  { %p814_p9 = pnand %p813_p8, %p807_p5 }
  0x33   :  { %817 = shalt.err (!%p814_p9)
}
  0x34   :  { %23 = dma.hbm_to_vmem [thread:$0]  %s1017_s0, 32, %s21_s9, [#allocation4]  }
  0x35   :  { %s897_s30 = smov [#allocation8]   ;;  %s898_s7 = smov [#allocation11]  }
  0x36   :  { %s39_s6 = sshll.u32 %s897_s30, 4  ;;  %s63_s8 = sshll.u32 %s898_s7, 4  ;;  %s40_s6 = int_to_ptr.vmem [resolvable:$true] %s39_s6  ;;  %s64_s8 = int_to_ptr.vmem [resolvable:$true] %s63_s8 }
  0x37   :  { %s818_s12 = scalar_lea.hbm %s1019_s2, 2048 }
  0x38   :  { %p819_p10 = scmp.ne.s32.totalorder %s1019_s2, %s818_s12  ;;  %p822_p11 = scmp.lt.u32.totalorder %s818_s12, %s1019_s2 }
  0x3a   :  { %p824_p12 = pnand %p822_p11, %p819_p10 }
  0x3c   :  { %827 = shalt.err (!%p824_p12)
}
  0x3d   :  { %s828_s0 = scalar_lea.vmem %s40_s6, 2048  ;;  %p833_p0 = scmp.lt.s32.totalorder %s40_s6, %s40_s6 }
  0x3e   :  { %p829_p13 = scmp.ne.s32.totalorder %s40_s6, %s828_s0  ;;  %p834_p1 = scmp.lt.s32.totalorder %s828_s0, %s828_s0 }
  0x40   :  { %p835_p2 = por %p834_p1, %p833_p0 }
  0x42   :  { %p836_p3 = pnand %p835_p2, %p829_p13 }
  0x44   :  { %839 = shalt.err (!%p836_p3)
}
  0x45   :  { %45 = dma.hbm_to_vmem [thread:$0]  %s1019_s2, 2048, %s40_s6, [#allocation7], %s895_s17, %s895_s17, %s896_s18  }
  0x46   :  { %s840_s21 = scalar_lea.hbm %s1021_s4, 2048 }
  0x47   :  { %p841_p4 = scmp.ne.s32.totalorder %s1021_s4, %s840_s21  ;;  %p844_p5 = scmp.lt.u32.totalorder %s840_s21, %s1021_s4 }
  0x49   :  { %p846_p6 = pnand %p844_p5, %p841_p4 }
  0x4b   :  { %849 = shalt.err (!%p846_p6)
}
  0x4c   :  { %s850_s26 = scalar_lea.vmem %s64_s8, 2048  ;;  %p855_p8 = scmp.lt.s32.totalorder %s64_s8, %s64_s8 }
  0x4d   :  { %p851_p7 = scmp.ne.s32.totalorder %s64_s8, %s850_s26  ;;  %p856_p9 = scmp.lt.s32.totalorder %s850_s26, %s850_s26 }
  0x4f   :  { %p857_p10 = por %p856_p9, %p855_p8 }
  0x51   :  { %p858_p11 = pnand %p857_p10, %p851_p7 }
  0x53   :  { %861 = shalt.err (!%p858_p11)
}
  0x54   :  { %s899_s2 = smov 64   ;;  %s900_s17 = smov 4  }
  0x55   :  { %69 = dma.hbm_to_vmem [thread:$0]  %s1021_s4, 2048, %s64_s8, [#allocation10], %s899_s2, %s899_s2, %s900_s17  }
  0x56   :  { %884 = dma.done.wait [#allocation4], 32  }
  0x57   :  { %885 = vsyncadd [#allocation4], 4294967264 }
  0x58   :  { %886 = dma.done.wait [#allocation7], 2064  }
  0x59   :  { %887 = vsyncadd [#allocation7], 4294965232 }
  0x5a   :  { %888 = dma.done.wait [#allocation10], 4096  }
  0x5b   :  { %889 = vsyncadd [#allocation10], 4294963200  ;;  %v1000_v0 = vld [vmem:[#allocation3] sm:$0x3]  ;;  %vm92_vm0 = vcmask 1041408   ;;  %v901_v35 = vmov 0  }
  0x5c   :  { %v91_v1 = vmul.f32 %v1000_v0, %v1000_v0  ;;  %v678_v2 = vld [vmem:[#allocation8 + $0x4] ss:$8 sps:$4 sm:$0xff]   ;;  %v682_v4 = vld [vmem:[#allocation8] ss:$8 sps:$4 sm:$0xff]   ;;  %v684_v7 = vld [vmem:[#allocation8 + $0x14] ss:$8 sps:$4 sm:$0xff]   ;;  %241 = vmatprep.mubr.bf16.mxu0 %v901_v35  ;;  %378 = vmatprep.mubr.bf16.mxu1 %v901_v35 }
  0x5d   :  { %v680_v3 = vld [vmem:[#allocation9 + $0x4] ss:$8 sps:$4 sm:$0xff]   ;;  %v683_v5 = vld [vmem:[#allocation9] ss:$8 sps:$4 sm:$0xff]   ;;  %209 = vmatprep.subr.bf16.mxu0 %v678_v2  ;;  %v686_v8 = vld [vmem:[#allocation9 + $0x14] ss:$8 sps:$4 sm:$0xff]  }
  0x5e   :  { %v93_v6 = vsel %vm92_vm0, %v91_v1, 0.0  ;;  %346 = vmatprep.subr.bf16.mxu1 %v680_v3  ;;  %210 = vmatpush1.bf16.msra.mxu0 %v682_v4  ;;  %v688_v9 = vld [vmem:[#allocation8 + $0x10] ss:$8 sps:$4 sm:$0xff]   ;;  %v690_v11 = vld [vmem:[#allocation8 + $0x24] ss:$8 sps:$4 sm:$0xff]   ;;  %s903_s4 = smov [#allocation12]  }
  0x5f   :  { %94 = vadd.xlane.f32.xlu0 %v93_v6  ;;  %347 = vmatpush1.bf16.msra.mxu1 %v683_v5  ;;  %v689_v10 = vld [vmem:[#allocation9 + $0x10] ss:$8 sps:$4 sm:$0xff]   ;;  %v692_v12 = vld [vmem:[#allocation9 + $0x24] ss:$8 sps:$4 sm:$0xff]   ;;  %v694_v13 = vld [vmem:[#allocation8 + $0x20] ss:$8 sps:$4 sm:$0xff]  }
  0x60   :  { %211 = vmatprep.subr.bf16.mxu0 %v684_v7  ;;  %348 = vmatprep.subr.bf16.mxu1 %v686_v8  ;;  %v695_v14 = vld [vmem:[#allocation9 + $0x20] ss:$8 sps:$4 sm:$0xff]   ;;  %v696_v15 = vld [vmem:[#allocation8 + $0x34] ss:$8 sps:$4 sm:$0xff]   ;;  %v700_v17 = vld [vmem:[#allocation8 + $0x30] ss:$8 sps:$4 sm:$0xff]  }
  0x61   :  { %v698_v16 = vld [vmem:[#allocation9 + $0x34] ss:$8 sps:$4 sm:$0xff]   ;;  %v701_v18 = vld [vmem:[#allocation9 + $0x30] ss:$8 sps:$4 sm:$0xff]   ;;  %v702_v19 = vld [vmem:[#allocation8 + $0x44] ss:$8 sps:$4 sm:$0xff]  }
  0x62   :  { %212 = vmatpush1.bf16.msra.mxu0 %v688_v9  ;;  %v704_v20 = vld [vmem:[#allocation9 + $0x44] ss:$8 sps:$4 sm:$0xff]   ;;  %v706_v21 = vld [vmem:[#allocation8 + $0x40] ss:$8 sps:$4 sm:$0xff]   ;;  %v708_v23 = vld [vmem:[#allocation8 + $0x54] ss:$8 sps:$4 sm:$0xff]  }
  0x63   :  { %349 = vmatpush1.bf16.msra.mxu1 %v689_v10  ;;  %213 = vmatprep.subr.bf16.mxu0 %v690_v11  ;;  %v707_v22 = vld [vmem:[#allocation9 + $0x40] ss:$8 sps:$4 sm:$0xff]   ;;  %v710_v24 = vld [vmem:[#allocation9 + $0x54] ss:$8 sps:$4 sm:$0xff]   ;;  %v712_v25 = vld [vmem:[#allocation8 + $0x50] ss:$8 sps:$4 sm:$0xff]  }
  0x64   :  { %350 = vmatprep.subr.bf16.mxu1 %v692_v12  ;;  %v713_v26 = vld [vmem:[#allocation9 + $0x50] ss:$8 sps:$4 sm:$0xff]   ;;  %v714_v27 = vld [vmem:[#allocation8 + $0x64] ss:$8 sps:$4 sm:$0xff]   ;;  %v718_v29 = vld [vmem:[#allocation8 + $0x60] ss:$8 sps:$4 sm:$0xff]  }
  0x65   :  { %v716_v28 = vld [vmem:[#allocation9 + $0x64] ss:$8 sps:$4 sm:$0xff]   ;;  %v719_v30 = vld [vmem:[#allocation9 + $0x60] ss:$8 sps:$4 sm:$0xff]   ;;  %v720_v31 = vld [vmem:[#allocation8 + $0x74] ss:$8 sps:$4 sm:$0xff]  }
  0x66   :  { %214 = vmatpush1.bf16.msra.mxu0 %v694_v13  ;;  %v722_v32 = vld [vmem:[#allocation9 + $0x74] ss:$8 sps:$4 sm:$0xff]   ;;  %v724_v33 = vld [vmem:[#allocation8 + $0x70] ss:$8 sps:$4 sm:$0xff]   ;;  %v726_v45 = vld [vmem:[#allocation11 + $0x40] sm:$0xff]   ;;  %s582_s28 = sshll.u32 %s903_s4, 4  ;;  %s583_s28 = int_to_ptr.vmem [resolvable:$true] %s582_s28 }
  0x67   :  { %351 = vmatpush1.bf16.msra.mxu1 %v695_v14  ;;  %215 = vmatprep.subr.bf16.mxu0 %v696_v15  ;;  %v725_v34 = vld [vmem:[#allocation9 + $0x70] ss:$8 sps:$4 sm:$0xff]   ;;  %v593_v40 = vld [vmem:[#allocation6] ss:$0 sm:$0xff]  ;;  %v727_v46 = vld [vmem:[#allocation11] sm:$0xff]   ;;  %s862_s3 = scalar_lea.vmem %s583_s28, 32  ;;  %p867_p13 = scmp.lt.s32.totalorder %s583_s28, %s583_s28 }
  0x68   :  { %352 = vmatprep.subr.bf16.mxu1 %v698_v16  ;;  %v728_v47 = vld [vmem:[#allocation11 + $0x48] sm:$0xff]   ;;  %v730_v49 = vld [vmem:[#allocation11 + $0x50] sm:$0xff]   ;;  %v732_v51 = vld [vmem:[#allocation11 + $0x58] sm:$0xff]   ;;  %p863_p12 = scmp.ne.s32.totalorder %s583_s28, %s862_s3  ;;  %p868_p0 = scmp.lt.s32.totalorder %s862_s3, %s862_s3 }
  0x69   :  { %v729_v48 = vld [vmem:[#allocation11 + $0x8] sm:$0xff]   ;;  %v731_v50 = vld [vmem:[#allocation11 + $0x10] sm:$0xff]   ;;  %v733_v52 = vld [vmem:[#allocation11 + $0x18] sm:$0xff]  }
  0x6a   :  { %216 = vmatpush1.bf16.msra.mxu0 %v700_v17  ;;  %v734_v53 = vld [vmem:[#allocation11 + $0x60] sm:$0xff]   ;;  %v736_v55 = vld [vmem:[#allocation11 + $0x68] sm:$0xff]   ;;  %v738_v57 = vld [vmem:[#allocation11 + $0x70] sm:$0xff]   ;;  %p869_p1 = por %p868_p0, %p867_p13 }
  0x6b   :  { %353 = vmatpush1.bf16.msra.mxu1 %v701_v18  ;;  %217 = vmatprep.subr.bf16.mxu0 %v702_v19  ;;  %v735_v54 = vld [vmem:[#allocation11 + $0x20] sm:$0xff]   ;;  %v737_v56 = vld [vmem:[#allocation11 + $0x28] sm:$0xff]   ;;  %v739_v58 = vld [vmem:[#allocation11 + $0x30] sm:$0xff]   ;;  %v902_v19 = vmov 0.0  }
  0x6c   :  { %354 = vmatprep.subr.bf16.mxu1 %v704_v20  ;;  %v740_v59 = vld [vmem:[#allocation11 + $0x78] sm:$0xff]   ;;  %111 = vst [vmem:[#allocation12] sm:$0x3] %v902_v19  ;;  %p870_p2 = pnand %p869_p1, %p863_p12 }
  0x6d   :  { %v741_v60 = vld [vmem:[#allocation11 + $0x38] sm:$0xff]  }
  0x6e   :  { %218 = vmatpush1.bf16.msra.mxu0 %v706_v21 }
  0x6f   :  { %355 = vmatpush1.bf16.msra.mxu1 %v707_v22  ;;  %219 = vmatprep.subr.bf16.mxu0 %v708_v23 }
  0x70   :  { %356 = vmatprep.subr.bf16.mxu1 %v710_v24 }
  0x72   :  { %220 = vmatpush1.bf16.msra.mxu0 %v712_v25 }
  0x73   :  { %357 = vmatpush1.bf16.msra.mxu1 %v713_v26  ;;  %221 = vmatprep.subr.bf16.mxu0 %v714_v27  ;;  %v405_v21 = vld [vmem:[#allocation12] sm:$0x3] }
  0x74   :  { %358 = vmatprep.subr.bf16.mxu1 %v716_v28 }
  0x76   :  { %222 = vmatpush1.bf16.msra.mxu0 %v718_v29 }
  0x77   :  { %359 = vmatpush1.bf16.msra.mxu1 %v719_v30  ;;  %223 = vmatprep.subr.bf16.mxu0 %v720_v31 }
  0x78   :  { %360 = vmatprep.subr.bf16.mxu1 %v722_v32 }
  0x7a   :  { %224 = vmatpush1.bf16.msra.mxu0 %v724_v33 }
  0x7b   :  { %361 = vmatpush1.bf16.msra.mxu1 %v725_v34  ;;  %644 = vmatprep.subr.bf16.mxu0 %v726_v45 }
  0xec   :  { %v95_v36 = vpop.xlane.xlu0 %94 }
  0xed   :  { %v97_v37 = vmul.f32 0.0078125, %v95_v36 }
  0xef   :  { %v98_v38 = vadd.f32 1e-06, %v97_v37 }
  0xf1   :  { %742 = vrsqrt.f32 %v98_v38 }
  0xfb   :  { %v743_v39 = vpop.eup %742 }
  0xfc   :  { %v100_v41 = vmul.f32 %v743_v39, %v1000_v0 }
  0xfe   :  { %v108_v42 = vmul.f32 %v593_v40, %v100_v41 }
 0x100   :  { %v109_v43 = vpack.c.bf16 %v108_v42, %v108_v42 }
 0x102   :  { %110 = vst [vmem:[#allocation2] sm:$0x1] %v109_v43 }
 0x109   :  { %v112_v44 = vld [vmem:[#allocation2] sm:$0x1] }
 0x10a   :  { %242 = vmatmul.mubr.bf16.vlgmr.msra.gmra.mrb[0].mxu0 %v112_v44  ;;  %379 = vmatmul.mubr.bf16.vlgmr.msra.gmra.mrb[0].mxu1 %v112_v44 }
 0x10b   :  { %645 = vmatpush3.bf16.msra.mxu0 %v727_v46 }
 0x10c   :  { %646 = vmatprep.subr.bf16.mxu0 %v728_v47 }
 0x10f   :  { %647 = vmatpush3.bf16.msra.mxu0 %v729_v48 }
 0x110   :  { %648 = vmatprep.subr.bf16.mxu0 %v730_v49 }
 0x113   :  { %649 = vmatpush3.bf16.msra.mxu0 %v731_v50 }
 0x114   :  { %650 = vmatprep.subr.bf16.mxu0 %v732_v51 }
 0x117   :  { %651 = vmatpush3.bf16.msra.mxu0 %v733_v52 }
 0x118   :  { %652 = vmatprep.subr.bf16.mxu0 %v734_v53 }
 0x11b   :  { %653 = vmatpush3.bf16.msra.mxu0 %v735_v54 }
 0x11c   :  { %654 = vmatprep.subr.bf16.mxu0 %v736_v55 }
 0x11f   :  { %655 = vmatpush3.bf16.msra.mxu0 %v737_v56 }
 0x120   :  { %656 = vmatprep.subr.bf16.mxu0 %v738_v57 }
 0x123   :  { %657 = vmatpush3.bf16.msra.mxu0 %v739_v58 }
 0x124   :  { %658 = vmatprep.subr.bf16.mxu0 %v740_v59 }
 0x127   :  { %659 = vmatpush3.bf16.msra.mxu0 %v741_v60 }
 0x1dd   :  { %v243_v61 = vpop.f32.mrb[0].mxu0  ;;  %v380_v62 = vpop.f32.mrb[0].mxu1 }
 0x1de   :  { %v626_v63 = vmul.f32 -1.442695, %v243_v61  ;;  %v245_v0 = vpop.f32.mrb[1].mxu0  ;;  %v382_v1 = vpop.f32.mrb[1].mxu1 }
 0x1df   :  { %v627_v2 = vmul.f32 -1.442695, %v245_v0  ;;  %v247_v3 = vpop.f32.mrb[2].mxu0  ;;  %v384_v4 = vpop.f32.mrb[2].mxu1 }
 0x1e0   :  { %744 = vpow2.f32 %v626_v63  ;;  %v248_v5 = vpop.f32.mrb[3].mxu0  ;;  %v385_v6 = vpop.f32.mrb[3].mxu1 }
 0x1e1   :  { %746 = vpow2.f32 %v627_v2 }
 0x1ea   :  { %v745_v7 = vpop.eup %744 }
 0x1eb   :  { %v747_v8 = vpop.eup %746  ;;  %v393_v9 = vadd.f32 1.0, %v745_v7 }
 0x1ec   :  { %v394_v10 = vadd.f32 1.0, %v747_v8 }
 0x1ed   :  { %748 = vrcp.f32 %v393_v9 }
 0x1ee   :  { %750 = vrcp.f32 %v394_v10 }
 0x1f7   :  { %v749_v11 = vpop.eup %748 }
 0x1f8   :  { %v751_v12 = vpop.eup %750  ;;  %v399_v13 = vmul.f32 %v749_v11, %v243_v61 }
 0x1f9   :  { %v400_v14 = vmul.f32 %v751_v12, %v245_v0 }
 0x1fa   :  { %v401_v15 = vmul.f32 %v399_v13, %v380_v62 }
 0x1fb   :  { %v402_v16 = vmul.f32 %v400_v14, %v382_v1 }
 0x1fc   :  { %v403_v18 = vpack.c.bf16 %v401_v15, %v401_v15 }
 0x1fd   :  { %v404_v17 = vpack.c.bf16 %v402_v16, %v402_v16 }
 0x1ff   :  { %566 = vmatprep.mubr.bf16.mxu0 %v404_v17 }
 0x200   :  { %567 = vmatmul.mubr.bf16.vlgmr.msra.gmra.mrb[4].mxu0 %v403_v18 }
 0x2d3   :  { %v660_v20 = vpop.f32.mrb[4].mxu0 }
 0x2d4   :  { %v661_v22 = vpop.f32.mrb[5].mxu0 }
 0x2d5   :  { %v662_v23 = vadd.f32 %v661_v22, %v660_v20  ;;  %v663_v24 = vpop.f32.mrb[6].mxu0 }
 0x2d6   :  { %v664_v25 = vpop.f32.mrb[7].mxu0 }
 0x2d7   :  { %v574_v26 = vadd.f32 %v662_v23, %v405_v21 }
 0x2d9   :  { %575 = vst [vmem:[#allocation12] sm:$0x3] %v574_v26 }
 0x2da   :  { %873 = shalt.err (!%p870_p2)
}
 0x2db   :  { %s874_s6 = scalar_lea.hbm %s1022_s5, 32 }
 0x2dc   :  { %p875_p3 = scmp.ne.s32.totalorder %s1022_s5, %s874_s6  ;;  %p878_p4 = scmp.lt.u32.totalorder %s874_s6, %s1022_s5 }
 0x2de   :  { %p880_p5 = pnand %p878_p4, %p875_p3 }
 0x2e0   :  { %883 = shalt.err (!%p880_p5)
}
 0x2e1   :  { %585 = dma.vmem_to_hbm [thread:$0]  %s583_s28, 32, %s1022_s5, [#allocation5]  }
 0x2e2   :  { %890 = dma.done.wait [#allocation5], 32  }
 0x2e3   :  { %891 = vsyncadd [#allocation5], 4294967264 }
 0x2e4   :  { %589 = vsyncpa [#allocation4], 1 }
 0x2e5   :  { %590 = vsyncpa [#allocation7], 1 }
 0x2e6   :  { %591 = vsyncpa [#allocation10], 1 }
 0x2e7   :  { %592 = vsyncpa [#allocation5], 1 }

</bundles_post_ra>
